<compile_context>
chip_gen: v6e
topology: v6e:2x2x1
jax: 0.10.0
libtpu: 0.0.40
codegen_flags: <defaults>
</compile_context>

<pallas_src>
import functools

import jax
import jax.numpy as jnp
from jax.experimental import pallas as pl
from jax.experimental.pallas import tpu as pltpu


def _round_up(x, m):
    return (x + m - 1) // m * m


# ---------------------------------------------------------------------------
# Pallas kernel 1: fused (im2col-)matmul + bias + optional ReLU.
#   out = maybe_relu(x @ W + b)        x,W: bf16; accumulate/epilogue: f32
# ---------------------------------------------------------------------------
def _matmul_bias_act_kernel(x_ref, w_ref, b_ref, o_ref, *, relu):
    acc = jnp.dot(x_ref[...], w_ref[...], preferred_element_type=jnp.float32)
    y = acc + b_ref[...]
    if relu:
        y = jnp.maximum(y, 0.0)
    o_ref[...] = y.astype(o_ref.dtype)


def fused_matmul_bias(x, w, b, *, relu, out_dtype):
    """x:[M,K] (bf16) @ w:[K,N] (bf16) + b:[1,N] (f32); M-tiled, parallel grid."""
    M, K = x.shape
    K2, N = w.shape
    assert K == K2
    TM = 256 if M > 256 else _round_up(max(M, 1), 8)
    M_pad = _round_up(M, TM)
    if M_pad != M:
        x = jnp.pad(x, ((0, M_pad - M), (0, 0)))
    kern = functools.partial(_matmul_bias_act_kernel, relu=relu)
    out = pl.pallas_call(
        kern,
        out_shape=jax.ShapeDtypeStruct((M_pad, N), out_dtype),
        grid=(M_pad // TM,),
        in_specs=[
            pl.BlockSpec((TM, K), lambda m: (m, 0)),
            pl.BlockSpec((K, N), lambda m: (0, 0)),
            pl.BlockSpec((1, N), lambda m: (0, 0)),
        ],
        out_specs=pl.BlockSpec((TM, N), lambda m: (m, 0)),
        compiler_params=pltpu.CompilerParams(dimension_semantics=("parallel",)),
        cost_estimate=pl.CostEstimate(
            flops=2 * M_pad * K * N,
            transcendentals=0,
            bytes_accessed=(M_pad * K * x.dtype.itemsize
                            + K * N * w.dtype.itemsize
                            + N * b.dtype.itemsize
                            + M_pad * N * jnp.dtype(out_dtype).itemsize),
        ),
    )(x, w, b)
    if M_pad != M:
        out = out[:M]
    return out


# ---------------------------------------------------------------------------
# Pallas kernel 2: fused FC stack  relu(relu(x@W4+b4)@W5+b5)@Wh+bh
# Head output pre-padded to 128 lanes; slice to n_actions outside the kernel.
# ---------------------------------------------------------------------------
def _fc_stack_kernel(x_ref, w4_ref, b4_ref, w5_ref, b5_ref, wh_ref, bh_ref, o_ref):
    h = jnp.dot(x_ref[...], w4_ref[...], preferred_element_type=jnp.float32)
    h = jnp.maximum(h + b4_ref[...], 0.0).astype(w5_ref.dtype)
    h = jnp.dot(h, w5_ref[...], preferred_element_type=jnp.float32)
    h = jnp.maximum(h + b5_ref[...], 0.0).astype(wh_ref.dtype)
    o = jnp.dot(h, wh_ref[...], preferred_element_type=jnp.float32)
    o_ref[...] = (o + bh_ref[...]).astype(o_ref.dtype)


def fc_stack(x, w4, b4, w5, b5, wh, bh):
    M, K = x.shape
    NH = wh.shape[1]
    TM = 256 if M > 256 else _round_up(max(M, 1), 8)
    M_pad = _round_up(M, TM)
    if M_pad != M:
        x = jnp.pad(x, ((0, M_pad - M), (0, 0)))
    flops = 2 * M_pad * (K * w4.shape[1]
                         + w5.shape[0] * w5.shape[1]
                         + wh.shape[0] * NH)
    out = pl.pallas_call(
        _fc_stack_kernel,
        out_shape=jax.ShapeDtypeStruct((M_pad, NH), jnp.float32),
        grid=(M_pad // TM,),
        in_specs=[
            pl.BlockSpec((TM, K), lambda m: (m, 0)),
            pl.BlockSpec(w4.shape, lambda m: (0, 0)),
            pl.BlockSpec(b4.shape, lambda m: (0, 0)),
            pl.BlockSpec(w5.shape, lambda m: (0, 0)),
            pl.BlockSpec(b5.shape, lambda m: (0, 0)),
            pl.BlockSpec(wh.shape, lambda m: (0, 0)),
            pl.BlockSpec(bh.shape, lambda m: (0, 0)),
        ],
        out_specs=pl.BlockSpec((TM, NH), lambda m: (m, 0)),
        compiler_params=pltpu.CompilerParams(dimension_semantics=("parallel",)),
        cost_estimate=pl.CostEstimate(
            flops=flops,
            transcendentals=0,
            bytes_accessed=(M_pad * K * 2
                            + (w4.size + w5.size + wh.size) * 2
                            + M_pad * NH * 4),
        ),
    )(x, w4, b4, w5, b5, wh, bh)
    return out[:M]


# ---------------------------------------------------------------------------
# Glue: im2col patch extraction (NHWC) and conv layer wrapper.
# ---------------------------------------------------------------------------
def im2col(x_nhwc, kh, kw, stride):
    B, H, W, C = x_nhwc.shape
    oh = (H - kh) // stride + 1
    ow = (W - kw) // stride + 1
    cols = []
    for i in range(kh):
        for j in range(kw):
            cols.append(x_nhwc[:, i:i + stride * oh:stride,
                               j:j + stride * ow:stride, :])
    patches = jnp.stack(cols, axis=3)           # [B, oh, ow, kh*kw, C]
    return patches.reshape(B * oh * ow, kh * kw * C), oh, ow


def conv_block(x_nhwc, w, b, *, kh, kw, stride):
    B = x_nhwc.shape[0]
    patches, oh, ow = im2col(x_nhwc, kh, kw, stride)
    n = w.shape[1]
    y = fused_matmul_bias(patches, w, b, relu=True, out_dtype=jnp.bfloat16)
    return y.reshape(B, oh, ow, n)


# ---------------------------------------------------------------------------
# Parameters: PyTorch-default-style init, then one-time preprocessing that
# folds scales / transposes / permutations / padding into the weights.
# ---------------------------------------------------------------------------
def _conv_size(s, k, st):
    return (s - (k - 1) - 1) // st + 1


def init_params(key, in_channels=3, n_actions=15, height=64, width=64):
    def conv_init(k, cout, cin, kh, kw):
        fan_in = cin * kh * kw
        bound = 1.0 / float(fan_in) ** 0.5
        k1, k2 = jax.random.split(k)
        w = jax.random.uniform(k1, (cout, cin, kh, kw), jnp.float32, -bound, bound)
        b = jax.random.uniform(k2, (cout,), jnp.float32, -bound, bound)
        return w, b

    def lin_init(k, cout, cin):
        bound = 1.0 / float(cin) ** 0.5
        k1, k2 = jax.random.split(k)
        w = jax.random.uniform(k1, (cout, cin), jnp.float32, -bound, bound)
        b = jax.random.uniform(k2, (cout,), jnp.float32, -bound, bound)
        return w, b

    convw = _conv_size(_conv_size(_conv_size(width, 8, 4), 4, 2), 3, 1)
    convh = _conv_size(_conv_size(_conv_size(height, 8, 4), 4, 2), 3, 1)
    lin_in = convw * convh * 64

    keys = jax.random.split(key, 6)
    p = {}
    p["w1"], p["b1"] = conv_init(keys[0], 32, in_channels, 8, 8)
    p["w2"], p["b2"] = conv_init(keys[1], 64, 32, 4, 4)
    p["w3"], p["b3"] = conv_init(keys[2], 64, 64, 3, 3)
    for i, c in [(1, 32), (2, 64), (3, 64)]:
        p[f"g{i}"] = jnp.ones((c,), jnp.float32)    # BN gamma
        p[f"be{i}"] = jnp.zeros((c,), jnp.float32)  # BN beta
        p[f"m{i}"] = jnp.zeros((c,), jnp.float32)   # running mean
        p[f"v{i}"] = jnp.ones((c,), jnp.float32)    # running var
    p["fc4_w"], p["fc4_b"] = lin_init(keys[3], 64, lin_in)
    p["fc5_w"], p["fc5_b"] = lin_init(keys[4], 64, 64)
    p["head_w"], p["head_b"] = lin_init(keys[5], n_actions, 64)
    return p


def prepare_params(p, *, n_actions=15, height=64, width=64, eps=1e-5):
    """One-time preprocessing: fold BN + /255 into weights, lay weights out
    for the kernels (done once, NOT per forward)."""

    def fold_conv(w, b, gamma, beta, mean, var, x_scale=1.0):
        cout, cin, kh, kw = w.shape
        inv_std = gamma / jnp.sqrt(var + eps)
        # [Cout,Cin,kh,kw] -> [kh*kw*Cin, Cout] matching im2col (i,j,c) order,
        # with the BN scale (and the input /255) folded in.
        w2 = jnp.transpose(w, (2, 3, 1, 0)).reshape(kh * kw * cin, cout)
        w2 = w2 * (inv_std * x_scale)[None, :]
        bias = (b - mean) * inv_std + beta
        return w2.astype(jnp.bfloat16), bias[None, :].astype(jnp.float32)

    pp = {}
    pp["cw1"], pp["cb1"] = fold_conv(p["w1"], p["b1"], p["g1"], p["be1"],
                                     p["m1"], p["v1"], x_scale=1.0 / 255.0)
    pp["cw2"], pp["cb2"] = fold_conv(p["w2"], p["b2"], p["g2"], p["be2"],
                                     p["m2"], p["v2"])
    pp["cw3"], pp["cb3"] = fold_conv(p["w3"], p["b3"], p["g3"], p["be3"],
                                     p["m3"], p["v3"])

    convw = _conv_size(_conv_size(_conv_size(width, 8, 4), 4, 2), 3, 1)
    convh = _conv_size(_conv_size(_conv_size(height, 8, 4), 4, 2), 3, 1)
    C = 64
    # Permute fc4 rows so flattening the NHWC conv output matches PyTorch's
    # NCHW .view(B, -1) order; removes a runtime activation transpose.
    hh, ww, cc = jnp.meshgrid(jnp.arange(convh), jnp.arange(convw),
                              jnp.arange(C), indexing="ij")
    perm = (cc * (convh * convw) + hh * convw + ww).reshape(-1)
    w4t = jnp.transpose(p["fc4_w"])[perm]                 # [lin_in, 64], NHWC row order
    pp["fw4"] = w4t.astype(jnp.bfloat16)
    pp["fb4"] = p["fc4_b"][None, :].astype(jnp.float32)
    pp["fw5"] = jnp.transpose(p["fc5_w"]).astype(jnp.bfloat16)
    pp["fb5"] = p["fc5_b"][None, :].astype(jnp.float32)

    # Pad the head to 128 output lanes (lane-dense stores); slice outside.
    wh = jnp.transpose(p["head_w"])                       # [64, n_actions]
    n_pad = _round_up(n_actions, 128)
    pp["fwh"] = jnp.pad(wh, ((0, 0), (0, n_pad - n_actions))).astype(jnp.bfloat16)
    pp["fbh"] = jnp.pad(p["head_b"], (0, n_pad - n_actions))[None, :].astype(jnp.float32)
    return pp


# ---------------------------------------------------------------------------
# Forward pass (mirrors DQN_conv.forward; BN in eval mode, /255 folded).
# ---------------------------------------------------------------------------
def dqn_conv_forward(pp, x_nchw, *, n_actions):
    # NCHW -> NHWC once on the raw input; values 0..255 are exact in bf16.
    x = jnp.transpose(x_nchw, (0, 2, 3, 1)).astype(jnp.bfloat16)
    x = conv_block(x, pp["cw1"], pp["cb1"], kh=8, kw=8, stride=4)
    x = conv_block(x, pp["cw2"], pp["cb2"], kh=4, kw=4, stride=2)
    x = conv_block(x, pp["cw3"], pp["cb3"], kh=3, kw=3, stride=1)
    B = x.shape[0]
    x = x.reshape(B, -1)          # NHWC flatten; fc4 rows were pre-permuted to match
    out = fc_stack(x, pp["fw4"], pp["fb4"], pp["fw5"], pp["fb5"],
                   pp["fwh"], pp["fbh"])
    return out[:, :n_actions]


if __name__ == "__main__":
    key = jax.random.PRNGKey(0)
    kx, kp = jax.random.split(key)

    B, C, H, W, n_actions = 2, 3, 64, 64, 15
    # Synthetic uint8-style image input (values 0..255), NCHW like PyTorch.
    x = jax.random.randint(kx, (B, C, H, W), 0, 256).astype(jnp.float32)

    params = init_params(kp, in_channels=C, n_actions=n_actions, height=H, width=W)
    pp = prepare_params(params, n_actions=n_actions, height=H, width=W)

    fwd = jax.jit(dqn_conv_forward, static_argnames=("n_actions",))
    out = fwd(pp, x, n_actions=n_actions)
    out = jax.block_until_ready(out)
    assert out.shape == (B, n_actions), out.shape
    assert out.dtype == jnp.float32
    print("KERNEL_OK")
</pallas_src>

<mosaic_0001>
module attributes {stable_mosaic.version = 11 : i64} {
  func.func @_matmul_bias_act_kernel(%arg0: i32, %arg1: memref<256x192xbf16, #tpu.memory_space<vmem>>, %arg2: memref<192x32xbf16, #tpu.memory_space<vmem>>, %arg3: memref<1x32xf32, #tpu.memory_space<vmem>>, %arg4: memref<256x32xbf16, #tpu.memory_space<vmem>>) attributes {dimension_semantics = [#tpu.dimension_semantics<parallel>], iteration_bounds = array<i64: 2>, scalar_prefetch = 0 : i64, scratch_operands = 0 : i64, tpu.core_type = #tpu.core_type<tc>, window_params = [{transform_indices = @transform_0, window_bounds = array<i64: 256, 192>}, {pipeline_mode = #tpu.pipeline_mode<synchronous>, transform_indices = @transform_1, window_bounds = array<i64: 192, 32>}, {pipeline_mode = #tpu.pipeline_mode<synchronous>, transform_indices = @transform_2, window_bounds = array<i64: 1, 32>}, {transform_indices = @transform_3, window_bounds = array<i64: 256, 32>}]} {
    %c0 = arith.constant 0 : index
    %c0_0 = arith.constant 0 : index
    %0 = vector.load %arg1[%c0, %c0_0] : memref<256x192xbf16, #tpu.memory_space<vmem>>, vector<256x192xbf16>
    %c0_1 = arith.constant 0 : index
    %c0_2 = arith.constant 0 : index
    %1 = vector.load %arg2[%c0_1, %c0_2] : memref<192x32xbf16, #tpu.memory_space<vmem>>, vector<192x32xbf16>
    %cst = arith.constant dense<0.000000e+00> : vector<256x32xf32>
    %2 = tpu.matmul %0, %1, %cst {dimension_numbers = #tpu.dot_dimension_numbers<[1], [0], [0], [1], [0, 0, 1, 1], [], []>} : vector<256x192xbf16>, vector<192x32xbf16>, vector<256x32xf32> -> vector<256x32xf32>
    %c0_3 = arith.constant 0 : index
    %c0_4 = arith.constant 0 : index
    %3 = vector.load %arg3[%c0_3, %c0_4] : memref<1x32xf32, #tpu.memory_space<vmem>>, vector<1x32xf32>
    %4 = vector.broadcast %3 : vector<1x32xf32> to vector<256x32xf32>
    %5 = arith.addf %2, %4 : vector<256x32xf32>
    %cst_5 = arith.constant 0.000000e+00 : f32
    %6 = vector.broadcast %cst_5 : f32 to vector<256x32xf32>
    %7 = arith.maximumf %5, %6 : vector<256x32xf32>
    %8 = arith.truncf %7 : vector<256x32xf32> to vector<256x32xbf16>
    %c0_6 = arith.constant 0 : index
    %c0_7 = arith.constant 0 : index
    %9 = vector.load %arg4[%c0_6, %c0_7] : memref<256x32xbf16, #tpu.memory_space<vmem>>, vector<256x32xbf16>
    tpu.vector_store %arg4[%c0_6, %c0_7], %8 {strides = array<i32>} : memref<256x32xbf16, #tpu.memory_space<vmem>>, vector<256x32xbf16>,
    return
  }
  func.func @transform_0(%arg0: i32) -> (i32, i32) {
    %c0_i32 = arith.constant 0 : i32
    %c0_i32_0 = arith.constant 0 : i32
    return %arg0, %c0_i32 : i32, i32
  }
  func.func @transform_1(%arg0: i32) -> (i32, i32) {
    %c0_i32 = arith.constant 0 : i32
    %c0_i32_0 = arith.constant 0 : i32
    %c0_i32_1 = arith.constant 0 : i32
    return %c0_i32, %c0_i32_0 : i32, i32
  }
  func.func @transform_2(%arg0: i32) -> (i32, i32) {
    %c0_i32 = arith.constant 0 : i32
    %c0_i32_0 = arith.constant 0 : i32
    %c0_i32_1 = arith.constant 0 : i32
    return %c0_i32, %c0_i32_0 : i32, i32
  }
  func.func @transform_3(%arg0: i32) -> (i32, i32) {
    %c0_i32 = arith.constant 0 : i32
    %c0_i32_0 = arith.constant 0 : i32
    return %arg0, %c0_i32 : i32, i32
  }
}

module attributes {stable_mosaic.version = 11 : i64} {
  func.func @_matmul_bias_act_kernel(%arg0: i32, %arg1: memref<72x512xbf16, #tpu.memory_space<vmem>>, %arg2: memref<512x64xbf16, #tpu.memory_space<vmem>>, %arg3: memref<1x64xf32, #tpu.memory_space<vmem>>, %arg4: memref<72x64xbf16, #tpu.memory_space<vmem>>) attributes {dimension_semantics = [#tpu.dimension_semantics<parallel>], iteration_bounds = array<i64: 1>, scalar_prefetch = 0 : i64, scratch_operands = 0 : i64, tpu.core_type = #tpu.core_type<tc>, window_params = [{transform_indices = @transform_0, window_bounds = array<i64: 72, 512>}, {pipeline_mode = #tpu.pipeline_mode<synchronous>, transform_indices = @transform_1, window_bounds = array<i64: 512, 64>}, {pipeline_mode = #tpu.pipeline_mode<synchronous>, transform_indices = @transform_2, window_bounds = array<i64: 1, 64>}, {transform_indices = @transform_3, window_bounds = array<i64: 72, 64>}]} {
    %c0 = arith.constant 0 : index
    %c0_0 = arith.constant 0 : index
    %0 = vector.load %arg1[%c0, %c0_0] : memref<72x512xbf16, #tpu.memory_space<vmem>>, vector<72x512xbf16>
    %c0_1 = arith.constant 0 : index
    %c0_2 = arith.constant 0 : index
    %1 = vector.load %arg2[%c0_1, %c0_2] : memref<512x64xbf16, #tpu.memory_space<vmem>>, vector<512x64xbf16>
    %cst = arith.constant dense<0.000000e+00> : vector<72x64xf32>
    %2 = tpu.matmul %0, %1, %cst {dimension_numbers = #tpu.dot_dimension_numbers<[1], [0], [0], [1], [0, 0, 1, 1], [], []>} : vector<72x512xbf16>, vector<512x64xbf16>, vector<72x64xf32> -> vector<72x64xf32>
    %c0_3 = arith.constant 0 : index
    %c0_4 = arith.constant 0 : index
    %3 = vector.load %arg3[%c0_3, %c0_4] : memref<1x64xf32, #tpu.memory_space<vmem>>, vector<1x64xf32>
    %4 = vector.broadcast %3 : vector<1x64xf32> to vector<72x64xf32>
    %5 = arith.addf %2, %4 : vector<72x64xf32>
    %cst_5 = arith.constant 0.000000e+00 : f32
    %6 = vector.broadcast %cst_5 : f32 to vector<72x64xf32>
    %7 = arith.maximumf %5, %6 : vector<72x64xf32>
    %8 = arith.truncf %7 : vector<72x64xf32> to vector<72x64xbf16>
    %c0_6 = arith.constant 0 : index
    %c0_7 = arith.constant 0 : index
    %9 = vector.load %arg4[%c0_6, %c0_7] : memref<72x64xbf16, #tpu.memory_space<vmem>>, vector<72x64xbf16>
    tpu.vector_store %arg4[%c0_6, %c0_7], %8 {strides = array<i32>} : memref<72x64xbf16, #tpu.memory_space<vmem>>, vector<72x64xbf16>,
    return
  }
  func.func @transform_0(%arg0: i32) -> (i32, i32) {
    %c0_i32 = arith.constant 0 : i32
    %c0_i32_0 = arith.constant 0 : i32
    return %arg0, %c0_i32 : i32, i32
  }
  func.func @transform_1(%arg0: i32) -> (i32, i32) {
    %c0_i32 = arith.constant 0 : i32
    %c0_i32_0 = arith.constant 0 : i32
    %c0_i32_1 = arith.constant 0 : i32
    return %c0_i32, %c0_i32_0 : i32, i32
  }
  func.func @transform_2(%arg0: i32) -> (i32, i32) {
    %c0_i32 = arith.constant 0 : i32
    %c0_i32_0 = arith.constant 0 : i32
    %c0_i32_1 = arith.constant 0 : i32
    return %c0_i32, %c0_i32_0 : i32, i32
  }
  func.func @transform_3(%arg0: i32) -> (i32, i32) {
    %c0_i32 = arith.constant 0 : i32
    %c0_i32_0 = arith.constant 0 : i32
    return %arg0, %c0_i32 : i32, i32
  }
}

module attributes {stable_mosaic.version = 11 : i64} {
  func.func @_matmul_bias_act_kernel(%arg0: i32, %arg1: memref<32x576xbf16, #tpu.memory_space<vmem>>, %arg2: memref<576x64xbf16, #tpu.memory_space<vmem>>, %arg3: memref<1x64xf32, #tpu.memory_space<vmem>>, %arg4: memref<32x64xbf16, #tpu.memory_space<vmem>>) attributes {dimension_semantics = [#tpu.dimension_semantics<parallel>], iteration_bounds = array<i64: 1>, scalar_prefetch = 0 : i64, scratch_operands = 0 : i64, tpu.core_type = #tpu.core_type<tc>, window_params = [{transform_indices = @transform_0, window_bounds = array<i64: 32, 576>}, {pipeline_mode = #tpu.pipeline_mode<synchronous>, transform_indices = @transform_1, window_bounds = array<i64: 576, 64>}, {pipeline_mode = #tpu.pipeline_mode<synchronous>, transform_indices = @transform_2, window_bounds = array<i64: 1, 64>}, {transform_indices = @transform_3, window_bounds = array<i64: 32, 64>}]} {
    %c0 = arith.constant 0 : index
    %c0_0 = arith.constant 0 : index
    %0 = vector.load %arg1[%c0, %c0_0] : memref<32x576xbf16, #tpu.memory_space<vmem>>, vector<32x576xbf16>
    %c0_1 = arith.constant 0 : index
    %c0_2 = arith.constant 0 : index
    %1 = vector.load %arg2[%c0_1, %c0_2] : memref<576x64xbf16, #tpu.memory_space<vmem>>, vector<576x64xbf16>
    %cst = arith.constant dense<0.000000e+00> : vector<32x64xf32>
    %2 = tpu.matmul %0, %1, %cst {dimension_numbers = #tpu.dot_dimension_numbers<[1], [0], [0], [1], [0, 0, 1, 1], [], []>} : vector<32x576xbf16>, vector<576x64xbf16>, vector<32x64xf32> -> vector<32x64xf32>
    %c0_3 = arith.constant 0 : index
    %c0_4 = arith.constant 0 : index
    %3 = vector.load %arg3[%c0_3, %c0_4] : memref<1x64xf32, #tpu.memory_space<vmem>>, vector<1x64xf32>
    %4 = vector.broadcast %3 : vector<1x64xf32> to vector<32x64xf32>
    %5 = arith.addf %2, %4 : vector<32x64xf32>
    %cst_5 = arith.constant 0.000000e+00 : f32
    %6 = vector.broadcast %cst_5 : f32 to vector<32x64xf32>
    %7 = arith.maximumf %5, %6 : vector<32x64xf32>
    %8 = arith.truncf %7 : vector<32x64xf32> to vector<32x64xbf16>
    %c0_6 = arith.constant 0 : index
    %c0_7 = arith.constant 0 : index
    %9 = vector.load %arg4[%c0_6, %c0_7] : memref<32x64xbf16, #tpu.memory_space<vmem>>, vector<32x64xbf16>
    tpu.vector_store %arg4[%c0_6, %c0_7], %8 {strides = array<i32>} : memref<32x64xbf16, #tpu.memory_space<vmem>>, vector<32x64xbf16>,
    return
  }
  func.func @transform_0(%arg0: i32) -> (i32, i32) {
    %c0_i32 = arith.constant 0 : i32
    %c0_i32_0 = arith.constant 0 : i32
    return %arg0, %c0_i32 : i32, i32
  }
  func.func @transform_1(%arg0: i32) -> (i32, i32) {
    %c0_i32 = arith.constant 0 : i32
    %c0_i32_0 = arith.constant 0 : i32
    %c0_i32_1 = arith.constant 0 : i32
    return %c0_i32, %c0_i32_0 : i32, i32
  }
  func.func @transform_2(%arg0: i32) -> (i32, i32) {
    %c0_i32 = arith.constant 0 : i32
    %c0_i32_0 = arith.constant 0 : i32
    %c0_i32_1 = arith.constant 0 : i32
    return %c0_i32, %c0_i32_0 : i32, i32
  }
  func.func @transform_3(%arg0: i32) -> (i32, i32) {
    %c0_i32 = arith.constant 0 : i32
    %c0_i32_0 = arith.constant 0 : i32
    return %arg0, %c0_i32 : i32, i32
  }
}

module attributes {stable_mosaic.version = 11 : i64} {
  func.func @_fc_stack_kernel(%arg0: i32, %arg1: memref<8x1024xbf16, #tpu.memory_space<vmem>>, %arg2: memref<1024x64xbf16, #tpu.memory_space<vmem>>, %arg3: memref<1x64xf32, #tpu.memory_space<vmem>>, %arg4: memref<64x64xbf16, #tpu.memory_space<vmem>>, %arg5: memref<1x64xf32, #tpu.memory_space<vmem>>, %arg6: memref<64x128xbf16, #tpu.memory_space<vmem>>, %arg7: memref<1x128xf32, #tpu.memory_space<vmem>>, %arg8: memref<8x128xf32, #tpu.memory_space<vmem>>) attributes {dimension_semantics = [#tpu.dimension_semantics<parallel>], iteration_bounds = array<i64: 1>, scalar_prefetch = 0 : i64, scratch_operands = 0 : i64, tpu.core_type = #tpu.core_type<tc>, window_params = [{transform_indices = @transform_0, window_bounds = array<i64: 8, 1024>}, {pipeline_mode = #tpu.pipeline_mode<synchronous>, transform_indices = @transform_1, window_bounds = array<i64: 1024, 64>}, {pipeline_mode = #tpu.pipeline_mode<synchronous>, transform_indices = @transform_2, window_bounds = array<i64: 1, 64>}, {pipeline_mode = #tpu.pipeline_mode<synchronous>, transform_indices = @transform_3, window_bounds = array<i64: 64, 64>}, {pipeline_mode = #tpu.pipeline_mode<synchronous>, transform_indices = @transform_4, window_bounds = array<i64: 1, 64>}, {pipeline_mode = #tpu.pipeline_mode<synchronous>, transform_indices = @transform_5, window_bounds = array<i64: 64, 128>}, {pipeline_mode = #tpu.pipeline_mode<synchronous>, transform_indices = @transform_6, window_bounds = array<i64: 1, 128>}, {transform_indices = @transform_7, window_bounds = array<i64: 8, 128>}]} {
    %c0 = arith.constant 0 : index
    %c0_0 = arith.constant 0 : index
    %0 = vector.load %arg1[%c0, %c0_0] : memref<8x1024xbf16, #tpu.memory_space<vmem>>, vector<8x1024xbf16>
    %c0_1 = arith.constant 0 : index
    %c0_2 = arith.constant 0 : index
    %1 = vector.load %arg2[%c0_1, %c0_2] : memref<1024x64xbf16, #tpu.memory_space<vmem>>, vector<1024x64xbf16>
    %cst = arith.constant dense<0.000000e+00> : vector<8x64xf32>
    %2 = tpu.matmul %0, %1, %cst {dimension_numbers = #tpu.dot_dimension_numbers<[1], [0], [0], [1], [0, 0, 1, 1], [], []>} : vector<8x1024xbf16>, vector<1024x64xbf16>, vector<8x64xf32> -> vector<8x64xf32>
    %c0_3 = arith.constant 0 : index
    %c0_4 = arith.constant 0 : index
    %3 = vector.load %arg3[%c0_3, %c0_4] : memref<1x64xf32, #tpu.memory_space<vmem>>, vector<1x64xf32>
    %4 = vector.broadcast %3 : vector<1x64xf32> to vector<8x64xf32>
    %5 = arith.addf %2, %4 : vector<8x64xf32>
    %cst_5 = arith.constant 0.000000e+00 : f32
    %6 = vector.broadcast %cst_5 : f32 to vector<8x64xf32>
    %7 = arith.maximumf %5, %6 : vector<8x64xf32>
    %8 = arith.truncf %7 : vector<8x64xf32> to vector<8x64xbf16>
    %c0_6 = arith.constant 0 : index
    %c0_7 = arith.constant 0 : index
    %9 = vector.load %arg4[%c0_6, %c0_7] : memref<64x64xbf16, #tpu.memory_space<vmem>>, vector<64x64xbf16>
    %cst_8 = arith.constant dense<0.000000e+00> : vector<8x64xf32>
    %10 = tpu.matmul %8, %9, %cst_8 {dimension_numbers = #tpu.dot_dimension_numbers<[1], [0], [0], [1], [0, 0, 1, 1], [], []>} : vector<8x64xbf16>, vector<64x64xbf16>, vector<8x64xf32> -> vector<8x64xf32>
    %c0_9 = arith.constant 0 : index
    %c0_10 = arith.constant 0 : index
    %11 = vector.load %arg5[%c0_9, %c0_10] : memref<1x64xf32, #tpu.memory_space<vmem>>, vector<1x64xf32>
    %12 = vector.broadcast %11 : vector<1x64xf32> to vector<8x64xf32>
    %13 = arith.addf %10, %12 : vector<8x64xf32>
    %cst_11 = arith.constant 0.000000e+00 : f32
    %14 = vector.broadcast %cst_11 : f32 to vector<8x64xf32>
    %15 = arith.maximumf %13, %14 : vector<8x64xf32>
    %16 = arith.truncf %15 : vector<8x64xf32> to vector<8x64xbf16>
    %c0_12 = arith.constant 0 : index
    %c0_13 = arith.constant 0 : index
    %17 = vector.load %arg6[%c0_12, %c0_13] : memref<64x128xbf16, #tpu.memory_space<vmem>>, vector<64x128xbf16>
    %cst_14 = arith.constant dense<0.000000e+00> : vector<8x128xf32>
    %18 = tpu.matmul %16, %17, %cst_14 {dimension_numbers = #tpu.dot_dimension_numbers<[1], [0], [0], [1], [0, 0, 1, 1], [], []>} : vector<8x64xbf16>, vector<64x128xbf16>, vector<8x128xf32> -> vector<8x128xf32>
    %c0_15 = arith.constant 0 : index
    %c0_16 = arith.constant 0 : index
    %19 = vector.load %arg7[%c0_15, %c0_16] : memref<1x128xf32, #tpu.memory_space<vmem>>, vector<1x128xf32>
    %20 = vector.broadcast %19 : vector<1x128xf32> to vector<8x128xf32>
    %21 = arith.addf %18, %20 : vector<8x128xf32>
    %c0_17 = arith.constant 0 : index
    %c0_18 = arith.constant 0 : index
    %22 = vector.load %arg8[%c0_17, %c0_18] : memref<8x128xf32, #tpu.memory_space<vmem>>, vector<8x128xf32>
    tpu.vector_store %arg8[%c0_17, %c0_18], %21 {strides = array<i32>} : memref<8x128xf32, #tpu.memory_space<vmem>>, vector<8x128xf32>,
    return
  }
  func.func @transform_0(%arg0: i32) -> (i32, i32) {
    %c0_i32 = arith.constant 0 : i32
    %c0_i32_0 = arith.constant 0 : i32
    return %arg0, %c0_i32 : i32, i32
  }
  func.func @transform_1(%arg0: i32) -> (i32, i32) {
    %c0_i32 = arith.constant 0 : i32
    %c0_i32_0 = arith.constant 0 : i32
    %c0_i32_1 = arith.constant 0 : i32
    return %c0_i32, %c0_i32_0 : i32, i32
  }
  func.func @transform_2(%arg0: i32) -> (i32, i32) {
    %c0_i32 = arith.constant 0 : i32
    %c0_i32_0 = arith.constant 0 : i32
    %c0_i32_1 = arith.constant 0 : i32
    return %c0_i32, %c0_i32_0 : i32, i32
  }
  func.func @transform_3(%arg0: i32) -> (i32, i32) {
    %c0_i32 = arith.constant 0 : i32
    %c0_i32_0 = arith.constant 0 : i32
    %c0_i32_1 = arith.constant 0 : i32
    return %c0_i32, %c0_i32_0 : i32, i32
  }
  func.func @transform_4(%arg0: i32) -> (i32, i32) {
    %c0_i32 = arith.constant 0 : i32
    %c0_i32_0 = arith.constant 0 : i32
    %c0_i32_1 = arith.constant 0 : i32
    return %c0_i32, %c0_i32_0 : i32, i32
  }
  func.func @transform_5(%arg0: i32) -> (i32, i32) {
    %c0_i32 = arith.constant 0 : i32
    %c0_i32_0 = arith.constant 0 : i32
    %c0_i32_1 = arith.constant 0 : i32
    return %c0_i32, %c0_i32_0 : i32, i32
  }
  func.func @transform_6(%arg0: i32) -> (i32, i32) {
    %c0_i32 = arith.constant 0 : i32
    %c0_i32_0 = arith.constant 0 : i32
    %c0_i32_1 = arith.constant 0 : i32
    return %c0_i32, %c0_i32_0 : i32, i32
  }
  func.func @transform_7(%arg0: i32) -> (i32, i32) {
    %c0_i32 = arith.constant 0 : i32
    %c0_i32_0 = arith.constant 0 : i32
    return %arg0, %c0_i32 : i32, i32
  }
}

</mosaic_0001>

<bundles_post_ra>
// kernel: dqn_conv_forward.4
= control target key start
LH: loop header
LB: loop body
LE: loop exit
PB: predicated region body
PF: predicated region fallthrough
CT: control target
= control target key end

     0   :  { %s1176_s12 = smov 0   ;;  %s1410_s0 = inlined_call_operand.vmem [shape: bf16[512,192], index: 0, kind: input, shape index: {}]   ;;  %s1411_s1 = inlined_call_operand.vmem [shape: bf16[192,32], index: 1, kind: input, shape index: {}]   ;;  %s1412_s2 = inlined_call_operand.vmem [shape: f32[1,32], index: 2, kind: input, shape index: {}]   ;;  %s1413_s3 = inlined_call_operand.vmem [shape: bf16[512,32], index: 3, kind: output, shape index: {}]  }
   0x1 LB: > { %s916_s13 = sadd.s32 4294967295, %s1153_s12   ;;  %p920_p0 = scmp.ge.s32.totalorder %s1153_s12, 1  ;;  %s1153_s12 = sphi %s1176_s12, %s13_s12  }
   0x2   : > { %p139_p1 = scmp.lt.s32.totalorder %s1153_s12, 3 }
   0x4   : > { %p140_p2 = pnand %p920_p0, %p139_p1 }
   0x5   : > { %s921_s16 = sshll.u32 (!%p140_p2), %s916_s13, 5 }
   0x6   : > { %143 = sbr.rel (%p140_p2) target bundleno = 320 (0x140), region = 32  ;;  %p165_p3 = scmp.lt.s32.totalorder (!%p140_p2), %s921_s16, 63 }
   0xb   : > { %v1087_v0 = vld [vmem:[%s1411_s1 + $0x38] sm:$0xff]   ;;  %v1155_v1 = vmov 0   ;;  %v1088_v2 = vld [vmem:[%s1411_s1 + $0x30] sm:$0xff]   ;;  %s1415_s16 = smov (!%p165_p3, %s921_s16), 63  ;;  %v1089_v3 = vld [vmem:[%s1411_s1 + $0x28] sm:$0xff]   ;;  %vm457_vm0 = vcmask 523264  }
   0xc   : > { %506 = vmatprep.subr.bf16.mxu0 %v1155_v1  ;;  %1054 = vmatprep.subr.bf16.mxu1 %v1155_v1  ;;  %s1021_s21 = sshll.u32 %s1415_s16, 3  ;;  %v1090_v4 = vld [vmem:[%s1411_s1 + $0x20] sm:$0xff]   ;;  %v1091_v6 = vld [vmem:[%s1411_s1 + $0x18] sm:$0xff]   ;;  %v1092_v8 = vld [vmem:[%s1411_s1 + $0x10] sm:$0xff]   ;;  %s925_s20 = sshll.u32 %s1415_s16, 2  ;;  %vm827_vm1 = vcmask 257024  }
   0xd   : > { %507 = vmatpush1.bf16.msra.mxu0 %v1087_v0  ;;  %1066 = vmatpush1.bf16.msra.mxu1 %v1087_v0  ;;  %s1208_s26 = scalar_lea.vmem %s1410_s0, %s1021_s21  ;;  %v1093_v9 = vld [vmem:[%s1411_s1 + $0x8] sm:$0xff]   ;;  %v1094_v10 = vld [vmem:[%s1411_s1] sm:$0xff]   ;;  %v1095_v11 = vld [vmem:[%s1411_s1 + $0x58] sm:$0xff]   ;;  %s1311_s23 = scalar_lea.vmem %s1413_s3, %s925_s20 }
   0xe   : > { %508 = vmatprep.subr.bf16.mxu0 %v1155_v1  ;;  %1055 = vmatprep.subr.bf16.mxu1 %v1155_v1  ;;  %v1101_v5 = vld [vmem:[%s1208_s26 + $0x4] ss:$8 sps:$4 sm:$0xff]   ;;  %v1096_v12 = vld [vmem:[%s1411_s1 + $0x50] sm:$0xff]   ;;  %v1099_v15 = vld [vmem:[%s1208_s26] ss:$8 sps:$4 sm:$0xff]  }
   0xf   : > { %v1104_v7 = vld [vmem:[%s1208_s26 + $0x84] ss:$8 sps:$4 sm:$0xff]   ;;  %971 = vmatprep.mubr.msk.bf16.mxu0 %vm457_vm0, %v1101_v5  ;;  %v1102_v16 = vld [vmem:[%s1208_s26 + $0x80] ss:$8 sps:$4 sm:$0xff]   ;;  %v1105_v17 = vld [vmem:[%s1208_s26 + $0x14] ss:$8 sps:$4 sm:$0xff]  }
  0x10   : > { %979 = vmatprep.mubr.msk.bf16.mxu1 %vm457_vm0, %v1104_v7  ;;  %v1097_v13 = vld [vmem:[%s1411_s1 + $0x48] sm:$0xff]   ;;  %v1098_v14 = vld [vmem:[%s1411_s1 + $0x40] sm:$0xff]   ;;  %v1107_v18 = vld [vmem:[%s1208_s26 + $0x94] ss:$8 sps:$4 sm:$0xff]  }
  0x11   : > { %509 = vmatpush1.bf16.msra.mxu0 %v1088_v2  ;;  %1067 = vmatpush1.bf16.msra.mxu1 %v1088_v2  ;;  %v1109_v19 = vld [vmem:[%s1208_s26 + $0x10] ss:$8 sps:$4 sm:$0xff]   ;;  %v1111_v21 = vld [vmem:[%s1208_s26 + $0x24] ss:$8 sps:$4 sm:$0xff]   ;;  %v1115_v23 = vld [vmem:[%s1208_s26 + $0x20] ss:$8 sps:$4 sm:$0xff]  }
  0x12   : > { %510 = vmatprep.subr.bf16.mxu0 %v1155_v1  ;;  %1056 = vmatprep.subr.bf16.mxu1 %v1155_v1  ;;  %v1110_v20 = vld [vmem:[%s1208_s26 + $0x90] ss:$8 sps:$4 sm:$0xff]   ;;  %v1113_v22 = vld [vmem:[%s1208_s26 + $0xa4] ss:$8 sps:$4 sm:$0xff]   ;;  %v1116_v24 = vld [vmem:[%s1208_s26 + $0xa0] ss:$8 sps:$4 sm:$0xff]  }
  0x13   : > { %v1117_v25 = vld [vmem:[%s1208_s26 + $0x34] ss:$8 sps:$4 sm:$0xff]   ;;  %v1121_v27 = vld [vmem:[%s1208_s26 + $0x30] ss:$8 sps:$4 sm:$0xff]   ;;  %v1123_v29 = vld [vmem:[%s1208_s26 + $0x44] ss:$8 sps:$4 sm:$0xff]  }
  0x14   : > { %v1119_v26 = vld [vmem:[%s1208_s26 + $0xb4] ss:$8 sps:$4 sm:$0xff]   ;;  %v1122_v28 = vld [vmem:[%s1208_s26 + $0xb0] ss:$8 sps:$4 sm:$0xff]   ;;  %v1125_v30 = vld [vmem:[%s1208_s26 + $0xc4] ss:$8 sps:$4 sm:$0xff]  }
  0x15   : > { %511 = vmatpush1.bf16.msra.mxu0 %v1089_v3  ;;  %1068 = vmatpush1.bf16.msra.mxu1 %v1089_v3  ;;  %v1127_v31 = vld [vmem:[%s1208_s26 + $0x40] ss:$8 sps:$4 sm:$0xff]   ;;  %v1129_v33 = vld [vmem:[%s1208_s26 + $0x54] ss:$8 sps:$4 sm:$0xff]   ;;  %v1133_v35 = vld [vmem:[%s1208_s26 + $0x50] ss:$8 sps:$4 sm:$0xff]  }
  0x16   : > { %512 = vmatprep.subr.bf16.mxu0 %v1155_v1  ;;  %1057 = vmatprep.subr.bf16.mxu1 %v1155_v1  ;;  %v1128_v32 = vld [vmem:[%s1208_s26 + $0xc0] ss:$8 sps:$4 sm:$0xff]   ;;  %v1131_v34 = vld [vmem:[%s1208_s26 + $0xd4] ss:$8 sps:$4 sm:$0xff]   ;;  %v1134_v36 = vld [vmem:[%s1208_s26 + $0xd0] ss:$8 sps:$4 sm:$0xff]  }
  0x17   : > { %v1135_v37 = vld [vmem:[%s1208_s26 + $0x64] ss:$8 sps:$4 sm:$0xff]   ;;  %v1139_v39 = vld [vmem:[%s1208_s26 + $0x60] ss:$8 sps:$4 sm:$0xff]   ;;  %v1141_v41 = vld [vmem:[%s1208_s26 + $0x74] ss:$8 sps:$4 sm:$0xff]  }
  0x18   : > { %v1137_v38 = vld [vmem:[%s1208_s26 + $0xe4] ss:$8 sps:$4 sm:$0xff]   ;;  %v1140_v40 = vld [vmem:[%s1208_s26 + $0xe0] ss:$8 sps:$4 sm:$0xff]   ;;  %v1143_v42 = vld [vmem:[%s1208_s26 + $0xf4] ss:$8 sps:$4 sm:$0xff]  }
  0x19   : > { %513 = vmatpush1.bf16.msra.mxu0 %v1090_v4  ;;  %1069 = vmatpush1.bf16.msra.mxu1 %v1090_v4  ;;  %v1145_v43 = vld [vmem:[%s1208_s26 + $0x70] ss:$8 sps:$4 sm:$0xff]   ;;  %v1303_v45 = vld [vmem:[%s1412_s2] ss:$0 sm:$0xff] }
  0x1a   : > { %514 = vmatprep.subr.bf16.mxu0 %v1155_v1  ;;  %1058 = vmatprep.subr.bf16.mxu1 %v1155_v1  ;;  %v1146_v44 = vld [vmem:[%s1208_s26 + $0xf0] ss:$8 sps:$4 sm:$0xff]  }
  0x1d   : > { %515 = vmatpush1.bf16.msra.mxu0 %v1091_v6  ;;  %1070 = vmatpush1.bf16.msra.mxu1 %v1091_v6 }
  0x1e   : > { %516 = vmatprep.subr.bf16.mxu0 %v1155_v1  ;;  %1059 = vmatprep.subr.bf16.mxu1 %v1155_v1 }
  0x21   : > { %517 = vmatpush1.bf16.msra.mxu0 %v1092_v8  ;;  %1071 = vmatpush1.bf16.msra.mxu1 %v1092_v8 }
  0x22   : > { %518 = vmatprep.subr.bf16.mxu0 %v1155_v1  ;;  %1060 = vmatprep.subr.bf16.mxu1 %v1155_v1 }
  0x25   : > { %519 = vmatpush1.bf16.msra.mxu0 %v1093_v9  ;;  %1072 = vmatpush1.bf16.msra.mxu1 %v1093_v9 }
  0x26   : > { %520 = vmatprep.subr.bf16.mxu0 %v1155_v1  ;;  %1061 = vmatprep.subr.bf16.mxu1 %v1155_v1 }
  0x29   : > { %521 = vmatpush1.bf16.msra.mxu0 %v1094_v10  ;;  %1073 = vmatpush1.bf16.msra.mxu1 %v1094_v10 }
  0x2a   : > { %530 = vmatprep.subr.bf16.mxu0 %v1155_v1  ;;  %1062 = vmatprep.subr.bf16.mxu1 %v1155_v1 }
  0x2d   : > { %531 = vmatpush2.bf16.msra.mxu0 %v1095_v11  ;;  %1074 = vmatpush2.bf16.msra.mxu1 %v1095_v11 }
  0x2e   : > { %532 = vmatprep.subr.bf16.mxu0 %v1155_v1  ;;  %1063 = vmatprep.subr.bf16.mxu1 %v1155_v1 }
  0x31   : > { %533 = vmatpush2.bf16.msra.mxu0 %v1096_v12  ;;  %1075 = vmatpush2.bf16.msra.mxu1 %v1096_v12 }
  0x32   : > { %534 = vmatprep.subr.bf16.mxu0 %v1155_v1  ;;  %1064 = vmatprep.subr.bf16.mxu1 %v1155_v1 }
  0x35   : > { %535 = vmatpush2.bf16.msra.mxu0 %v1097_v13  ;;  %1076 = vmatpush2.bf16.msra.mxu1 %v1097_v13 }
  0x36   : > { %536 = vmatprep.subr.bf16.mxu0 %v1155_v1  ;;  %1065 = vmatprep.subr.bf16.mxu1 %v1155_v1 }
  0x39   : > { %537 = vmatpush2.bf16.msra.mxu0 %v1098_v14  ;;  %1077 = vmatpush2.bf16.msra.mxu1 %v1098_v14 }
  0x3c   : > { %539 = vmatmul.mubr.bf16.vlgmr.msra.gmra.mxu0 %v1099_v15  ;;  %603 = vmatmul.mubr.bf16.vlgmr.msra.gmra.mxu1 %v1102_v16 }
  0x3d   : > { %972 = vmatprep.mubr.msk.bf16.mxu0 %vm457_vm0, %v1105_v17  ;;  %980 = vmatprep.mubr.msk.bf16.mxu1 %vm457_vm0, %v1107_v18 }
  0x44   : > { %547 = vmatmul.mubr.bf16.gmra.mxu0 %v1109_v19  ;;  %611 = vmatmul.mubr.bf16.gmra.mxu1 %v1110_v20 }
  0x45   : > { %973 = vmatprep.mubr.msk.bf16.mxu0 %vm457_vm0, %v1111_v21  ;;  %981 = vmatprep.mubr.msk.bf16.mxu1 %vm457_vm0, %v1113_v22 }
  0x4c   : > { %555 = vmatmul.mubr.bf16.gmra.mxu0 %v1115_v23  ;;  %619 = vmatmul.mubr.bf16.gmra.mxu1 %v1116_v24 }
  0x4d   : > { %974 = vmatprep.mubr.msk.bf16.mxu0 %vm457_vm0, %v1117_v25  ;;  %982 = vmatprep.mubr.msk.bf16.mxu1 %vm457_vm0, %v1119_v26 }
  0x54   : > { %563 = vmatmul.mubr.bf16.gmra.mxu0 %v1121_v27  ;;  %627 = vmatmul.mubr.bf16.gmra.mxu1 %v1122_v28 }
  0x55   : > { %975 = vmatprep.mubr.msk.bf16.mxu0 %vm457_vm0, %v1123_v29  ;;  %983 = vmatprep.mubr.msk.bf16.mxu1 %vm457_vm0, %v1125_v30 }
  0x5c   : > { %571 = vmatmul.mubr.bf16.gmra.mxu0 %v1127_v31  ;;  %635 = vmatmul.mubr.bf16.gmra.mxu1 %v1128_v32 }
  0x5d   : > { %976 = vmatprep.mubr.msk.bf16.mxu0 %vm457_vm0, %v1129_v33  ;;  %984 = vmatprep.mubr.msk.bf16.mxu1 %vm457_vm0, %v1131_v34 }
  0x64   : > { %579 = vmatmul.mubr.bf16.gmra.mxu0 %v1133_v35  ;;  %643 = vmatmul.mubr.bf16.gmra.mxu1 %v1134_v36 }
  0x65   : > { %977 = vmatprep.mubr.msk.bf16.mxu0 %vm457_vm0, %v1135_v37  ;;  %985 = vmatprep.mubr.msk.bf16.mxu1 %vm457_vm0, %v1137_v38 }
  0x6c   : > { %587 = vmatmul.mubr.bf16.gmra.mxu0 %v1139_v39  ;;  %651 = vmatmul.mubr.bf16.gmra.mxu1 %v1140_v40 }
  0x6d   : > { %978 = vmatprep.mubr.msk.bf16.mxu0 %vm457_vm0, %v1141_v41  ;;  %986 = vmatprep.mubr.msk.bf16.mxu1 %vm457_vm0, %v1143_v42 }
  0x74   : > { %595 = vmatmul.mubr.bf16.gmra.mxu0 %v1145_v43  ;;  %659 = vmatmul.mubr.bf16.gmra.mxu1 %v1146_v44 }
  0xfc   : > { %v540_v46 = vpop.f32.mrf.mxu0  ;;  %v604_v47 = vpop.f32.mrf.mxu1 }
  0xfd   : > { %v541_v48 = vadd.f32 %v1303_v45, %v540_v46  ;;  %v605_v49 = vadd.f32 %v1303_v45, %v604_v47 }
  0xfe   : > { %v542_v50 = vpop.f32.mrf.mxu0  ;;  %v606_v51 = vpop.f32.mrf.mxu1 }
  0xff   : > { %v667_v52 = vmax.f32 %v541_v48, 0.0  ;;  %v683_v53 = vmax.f32 %v605_v49, 0.0 }
 0x100   : > { %v543_v54 = vpop.f32.mrf.mxu0  ;;  %v607_v55 = vpop.f32.mrf.mxu1 }
 0x101   : > { %v1022_v56 = vpack.c.bf16 %v667_v52, %v667_v52  ;;  %v1038_v57 = vpack.c.bf16 %v683_v53, %v683_v53  ;;  %v544_v58 = vadd.f32 %v1303_v45, %v543_v54  ;;  %v608_v59 = vadd.f32 %v1303_v45, %v607_v55 }
 0x102   : > { %v545_v60 = vpop.f32.mrf.mxu0  ;;  %v609_v61 = vpop.f32.mrf.mxu1 }
 0x103   : > { %828 = vst.msk [vmem:[%s1311_s23] sm:$0xf] %vm827_vm1, %v1022_v56  ;;  %844 = vst.msk [vmem:[%s1311_s23 + $0x40] sm:$0xf] %vm827_vm1, %v1038_v57  ;;  %v668_v62 = vmax.f32 %v544_v58, 0.0  ;;  %v684_v63 = vmax.f32 %v608_v59, 0.0 }
 0x104   : > { %v548_v0 = vpop.f32.mrf.mxu0  ;;  %v612_v1 = vpop.f32.mrf.mxu1 }
 0x105   : > { %v1023_v2 = vpack.c.bf16 %v668_v62, %v668_v62  ;;  %v1039_v3 = vpack.c.bf16 %v684_v63, %v684_v63  ;;  %v549_v4 = vadd.f32 %v1303_v45, %v548_v0  ;;  %v613_v5 = vadd.f32 %v1303_v45, %v612_v1 }
 0x106   : > { %v550_v6 = vpop.f32.mrf.mxu0  ;;  %v614_v7 = vpop.f32.mrf.mxu1 }
 0x107   : > { %829 = vst.msk [vmem:[%s1311_s23 + $0x4] sm:$0xf] %vm827_vm1, %v1023_v2  ;;  %845 = vst.msk [vmem:[%s1311_s23 + $0x44] sm:$0xf] %vm827_vm1, %v1039_v3  ;;  %v669_v8 = vmax.f32 %v549_v4, 0.0  ;;  %v685_v9 = vmax.f32 %v613_v5, 0.0 }
 0x108   : > { %v551_v10 = vpop.f32.mrf.mxu0  ;;  %v615_v11 = vpop.f32.mrf.mxu1 }
 0x109   : > { %v1024_v12 = vpack.c.bf16 %v669_v8, %v669_v8  ;;  %v1040_v13 = vpack.c.bf16 %v685_v9, %v685_v9  ;;  %v552_v14 = vadd.f32 %v1303_v45, %v551_v10  ;;  %v616_v15 = vadd.f32 %v1303_v45, %v615_v11 }
 0x10a   : > { %v553_v16 = vpop.f32.mrf.mxu0  ;;  %v617_v17 = vpop.f32.mrf.mxu1 }
 0x10b   : > { %830 = vst.msk [vmem:[%s1311_s23 + $0x8] sm:$0xf] %vm827_vm1, %v1024_v12  ;;  %846 = vst.msk [vmem:[%s1311_s23 + $0x48] sm:$0xf] %vm827_vm1, %v1040_v13  ;;  %v670_v18 = vmax.f32 %v552_v14, 0.0  ;;  %v686_v19 = vmax.f32 %v616_v15, 0.0 }
 0x10c   : > { %v556_v20 = vpop.f32.mrf.mxu0  ;;  %v620_v21 = vpop.f32.mrf.mxu1 }
 0x10d   : > { %v1025_v22 = vpack.c.bf16 %v670_v18, %v670_v18  ;;  %v1041_v23 = vpack.c.bf16 %v686_v19, %v686_v19  ;;  %v557_v24 = vadd.f32 %v1303_v45, %v556_v20  ;;  %v621_v25 = vadd.f32 %v1303_v45, %v620_v21 }
 0x10e   : > { %v558_v26 = vpop.f32.mrf.mxu0  ;;  %v622_v27 = vpop.f32.mrf.mxu1 }
 0x10f   : > { %831 = vst.msk [vmem:[%s1311_s23 + $0xc] sm:$0xf] %vm827_vm1, %v1025_v22  ;;  %847 = vst.msk [vmem:[%s1311_s23 + $0x4c] sm:$0xf] %vm827_vm1, %v1041_v23  ;;  %v671_v28 = vmax.f32 %v557_v24, 0.0  ;;  %v687_v29 = vmax.f32 %v621_v25, 0.0 }
 0x110   : > { %v559_v30 = vpop.f32.mrf.mxu0  ;;  %v623_v31 = vpop.f32.mrf.mxu1 }
 0x111   : > { %v1026_v32 = vpack.c.bf16 %v671_v28, %v671_v28  ;;  %v1042_v33 = vpack.c.bf16 %v687_v29, %v687_v29  ;;  %v560_v34 = vadd.f32 %v1303_v45, %v559_v30  ;;  %v624_v35 = vadd.f32 %v1303_v45, %v623_v31 }
 0x112   : > { %v561_v36 = vpop.f32.mrf.mxu0  ;;  %v625_v37 = vpop.f32.mrf.mxu1 }
 0x113   : > { %832 = vst.msk [vmem:[%s1311_s23 + $0x10] sm:$0xf] %vm827_vm1, %v1026_v32  ;;  %848 = vst.msk [vmem:[%s1311_s23 + $0x50] sm:$0xf] %vm827_vm1, %v1042_v33  ;;  %v672_v38 = vmax.f32 %v560_v34, 0.0  ;;  %v688_v39 = vmax.f32 %v624_v35, 0.0 }
 0x114   : > { %v564_v40 = vpop.f32.mrf.mxu0  ;;  %v628_v41 = vpop.f32.mrf.mxu1 }
 0x115   : > { %v1027_v42 = vpack.c.bf16 %v672_v38, %v672_v38  ;;  %v1043_v43 = vpack.c.bf16 %v688_v39, %v688_v39  ;;  %v565_v44 = vadd.f32 %v1303_v45, %v564_v40  ;;  %v629_v46 = vadd.f32 %v1303_v45, %v628_v41 }
 0x116   : > { %v566_v47 = vpop.f32.mrf.mxu0  ;;  %v630_v48 = vpop.f32.mrf.mxu1 }
 0x117   : > { %833 = vst.msk [vmem:[%s1311_s23 + $0x14] sm:$0xf] %vm827_vm1, %v1027_v42  ;;  %849 = vst.msk [vmem:[%s1311_s23 + $0x54] sm:$0xf] %vm827_vm1, %v1043_v43  ;;  %v673_v49 = vmax.f32 %v565_v44, 0.0  ;;  %v689_v50 = vmax.f32 %v629_v46, 0.0 }
 0x118   : > { %v567_v51 = vpop.f32.mrf.mxu0  ;;  %v631_v52 = vpop.f32.mrf.mxu1 }
 0x119   : > { %v1028_v53 = vpack.c.bf16 %v673_v49, %v673_v49  ;;  %v1044_v54 = vpack.c.bf16 %v689_v50, %v689_v50  ;;  %v568_v55 = vadd.f32 %v1303_v45, %v567_v51  ;;  %v632_v56 = vadd.f32 %v1303_v45, %v631_v52 }
 0x11a   : > { %v569_v57 = vpop.f32.mrf.mxu0  ;;  %v633_v58 = vpop.f32.mrf.mxu1 }
 0x11b   : > { %834 = vst.msk [vmem:[%s1311_s23 + $0x18] sm:$0xf] %vm827_vm1, %v1028_v53  ;;  %850 = vst.msk [vmem:[%s1311_s23 + $0x58] sm:$0xf] %vm827_vm1, %v1044_v54  ;;  %v674_v59 = vmax.f32 %v568_v55, 0.0  ;;  %v690_v60 = vmax.f32 %v632_v56, 0.0 }
 0x11c   : > { %v572_v61 = vpop.f32.mrf.mxu0  ;;  %v636_v62 = vpop.f32.mrf.mxu1 }
 0x11d   : > { %v1029_v63 = vpack.c.bf16 %v674_v59, %v674_v59  ;;  %v1045_v0 = vpack.c.bf16 %v690_v60, %v690_v60  ;;  %v573_v1 = vadd.f32 %v1303_v45, %v572_v61  ;;  %v637_v2 = vadd.f32 %v1303_v45, %v636_v62 }
 0x11e   : > { %v574_v3 = vpop.f32.mrf.mxu0  ;;  %v638_v4 = vpop.f32.mrf.mxu1 }
 0x11f   : > { %835 = vst.msk [vmem:[%s1311_s23 + $0x1c] sm:$0xf] %vm827_vm1, %v1029_v63  ;;  %851 = vst.msk [vmem:[%s1311_s23 + $0x5c] sm:$0xf] %vm827_vm1, %v1045_v0  ;;  %v675_v5 = vmax.f32 %v573_v1, 0.0  ;;  %v691_v6 = vmax.f32 %v637_v2, 0.0 }
 0x120   : > { %v575_v7 = vpop.f32.mrf.mxu0  ;;  %v639_v8 = vpop.f32.mrf.mxu1 }
 0x121   : > { %v1030_v9 = vpack.c.bf16 %v675_v5, %v675_v5  ;;  %v1046_v10 = vpack.c.bf16 %v691_v6, %v691_v6  ;;  %v576_v11 = vadd.f32 %v1303_v45, %v575_v7  ;;  %v640_v12 = vadd.f32 %v1303_v45, %v639_v8 }
 0x122   : > { %v577_v13 = vpop.f32.mrf.mxu0  ;;  %v641_v14 = vpop.f32.mrf.mxu1 }
 0x123   : > { %836 = vst.msk [vmem:[%s1311_s23 + $0x20] sm:$0xf] %vm827_vm1, %v1030_v9  ;;  %852 = vst.msk [vmem:[%s1311_s23 + $0x60] sm:$0xf] %vm827_vm1, %v1046_v10  ;;  %v676_v15 = vmax.f32 %v576_v11, 0.0  ;;  %v692_v16 = vmax.f32 %v640_v12, 0.0 }
 0x124   : > { %v580_v17 = vpop.f32.mrf.mxu0  ;;  %v644_v18 = vpop.f32.mrf.mxu1 }
 0x125   : > { %v1031_v19 = vpack.c.bf16 %v676_v15, %v676_v15  ;;  %v1047_v20 = vpack.c.bf16 %v692_v16, %v692_v16  ;;  %v581_v21 = vadd.f32 %v1303_v45, %v580_v17  ;;  %v645_v22 = vadd.f32 %v1303_v45, %v644_v18 }
 0x126   : > { %v582_v23 = vpop.f32.mrf.mxu0  ;;  %v646_v24 = vpop.f32.mrf.mxu1 }
 0x127   : > { %837 = vst.msk [vmem:[%s1311_s23 + $0x24] sm:$0xf] %vm827_vm1, %v1031_v19  ;;  %853 = vst.msk [vmem:[%s1311_s23 + $0x64] sm:$0xf] %vm827_vm1, %v1047_v20  ;;  %v677_v25 = vmax.f32 %v581_v21, 0.0  ;;  %v693_v26 = vmax.f32 %v645_v22, 0.0 }
 0x128   : > { %v583_v27 = vpop.f32.mrf.mxu0  ;;  %v647_v28 = vpop.f32.mrf.mxu1 }
 0x129   : > { %v1032_v29 = vpack.c.bf16 %v677_v25, %v677_v25  ;;  %v1048_v30 = vpack.c.bf16 %v693_v26, %v693_v26  ;;  %v584_v31 = vadd.f32 %v1303_v45, %v583_v27  ;;  %v648_v32 = vadd.f32 %v1303_v45, %v647_v28 }
 0x12a   : > { %v585_v33 = vpop.f32.mrf.mxu0  ;;  %v649_v34 = vpop.f32.mrf.mxu1 }
 0x12b   : > { %838 = vst.msk [vmem:[%s1311_s23 + $0x28] sm:$0xf] %vm827_vm1, %v1032_v29  ;;  %854 = vst.msk [vmem:[%s1311_s23 + $0x68] sm:$0xf] %vm827_vm1, %v1048_v30  ;;  %v678_v35 = vmax.f32 %v584_v31, 0.0  ;;  %v694_v36 = vmax.f32 %v648_v32, 0.0 }
 0x12c   : > { %v588_v37 = vpop.f32.mrf.mxu0  ;;  %v652_v38 = vpop.f32.mrf.mxu1 }
 0x12d   : > { %v1033_v39 = vpack.c.bf16 %v678_v35, %v678_v35  ;;  %v1049_v40 = vpack.c.bf16 %v694_v36, %v694_v36  ;;  %v589_v41 = vadd.f32 %v1303_v45, %v588_v37  ;;  %v653_v42 = vadd.f32 %v1303_v45, %v652_v38 }
 0x12e   : > { %v590_v43 = vpop.f32.mrf.mxu0  ;;  %v654_v44 = vpop.f32.mrf.mxu1 }
 0x12f   : > { %839 = vst.msk [vmem:[%s1311_s23 + $0x2c] sm:$0xf] %vm827_vm1, %v1033_v39  ;;  %855 = vst.msk [vmem:[%s1311_s23 + $0x6c] sm:$0xf] %vm827_vm1, %v1049_v40  ;;  %v679_v46 = vmax.f32 %v589_v41, 0.0  ;;  %v695_v47 = vmax.f32 %v653_v42, 0.0 }
 0x130   : > { %v591_v48 = vpop.f32.mrf.mxu0  ;;  %v655_v49 = vpop.f32.mrf.mxu1 }
 0x131   : > { %v1034_v50 = vpack.c.bf16 %v679_v46, %v679_v46  ;;  %v1050_v51 = vpack.c.bf16 %v695_v47, %v695_v47  ;;  %v592_v52 = vadd.f32 %v1303_v45, %v591_v48  ;;  %v656_v53 = vadd.f32 %v1303_v45, %v655_v49 }
 0x132   : > { %v593_v54 = vpop.f32.mrf.mxu0  ;;  %v657_v55 = vpop.f32.mrf.mxu1 }
 0x133   : > { %840 = vst.msk [vmem:[%s1311_s23 + $0x30] sm:$0xf] %vm827_vm1, %v1034_v50  ;;  %856 = vst.msk [vmem:[%s1311_s23 + $0x70] sm:$0xf] %vm827_vm1, %v1050_v51  ;;  %v680_v56 = vmax.f32 %v592_v52, 0.0  ;;  %v696_v57 = vmax.f32 %v656_v53, 0.0 }
 0x134   : > { %v596_v58 = vpop.f32.mrf.mxu0  ;;  %v660_v59 = vpop.f32.mrf.mxu1 }
 0x135   : > { %v1035_v60 = vpack.c.bf16 %v680_v56, %v680_v56  ;;  %v1051_v61 = vpack.c.bf16 %v696_v57, %v696_v57  ;;  %v597_v62 = vadd.f32 %v1303_v45, %v596_v58  ;;  %v661_v63 = vadd.f32 %v1303_v45, %v660_v59 }
 0x136   : > { %v598_v0 = vpop.f32.mrf.mxu0  ;;  %v662_v1 = vpop.f32.mrf.mxu1 }
 0x137   : > { %841 = vst.msk [vmem:[%s1311_s23 + $0x34] sm:$0xf] %vm827_vm1, %v1035_v60  ;;  %857 = vst.msk [vmem:[%s1311_s23 + $0x74] sm:$0xf] %vm827_vm1, %v1051_v61  ;;  %v681_v2 = vmax.f32 %v597_v62, 0.0  ;;  %v697_v3 = vmax.f32 %v661_v63, 0.0 }
 0x138   : > { %v599_v4 = vpop.f32.mrf.mxu0  ;;  %v663_v5 = vpop.f32.mrf.mxu1 }
 0x139   : > { %v1036_v6 = vpack.c.bf16 %v681_v2, %v681_v2  ;;  %v1052_v7 = vpack.c.bf16 %v697_v3, %v697_v3  ;;  %v600_v8 = vadd.f32 %v1303_v45, %v599_v4  ;;  %v664_v9 = vadd.f32 %v1303_v45, %v663_v5 }
 0x13a   : > { %v601_v10 = vpop.f32.mrf.mxu0  ;;  %v665_v11 = vpop.f32.mrf.mxu1 }
 0x13b   : > { %842 = vst.msk [vmem:[%s1311_s23 + $0x38] sm:$0xf] %vm827_vm1, %v1036_v6  ;;  %858 = vst.msk [vmem:[%s1311_s23 + $0x78] sm:$0xf] %vm827_vm1, %v1052_v7  ;;  %v682_v12 = vmax.f32 %v600_v8, 0.0  ;;  %v698_v13 = vmax.f32 %v664_v9, 0.0 }
 0x13d   : > { %v1037_v14 = vpack.c.bf16 %v682_v12, %v682_v12  ;;  %v1053_v15 = vpack.c.bf16 %v698_v13, %v698_v13 }
 0x13f   : > { %843 = vst.msk [vmem:[%s1311_s23 + $0x3c] sm:$0xf] %vm827_vm1, %v1037_v14  ;;  %859 = vst.msk [vmem:[%s1311_s23 + $0x7c] sm:$0xf] %vm827_vm1, %v1053_v15 }
 0x140 PF: > { %s13_s12 = sadd.s32 1, %s1153_s12  }
 0x141   : > { %p10_p4 = scmp.ge.s32.totalorder %s13_s12, 4  }
 0x143   :  { %12 = sbr.rel (!%p10_p4) target bundleno = 1 (0x1), region = 62 }

// kernel: dqn_conv_forward.5
= control target key start
LH: loop header
LB: loop body
LE: loop exit
PB: predicated region body
PF: predicated region fallthrough
CT: control target
= control target key end

     0   :  { %vm580_vm0 = vcmask 519168   ;;  %s1037_s1 = inlined_call_operand.vmem [shape: bf16[512,64], index: 1, kind: input, shape index: {}]   ;;  %s1038_s0 = inlined_call_operand.vmem [shape: bf16[72,512], index: 0, kind: input, shape index: {}]   ;;  %s1039_s2 = inlined_call_operand.vmem [shape: f32[1,64], index: 2, kind: input, shape index: {}]   ;;  %s1040_s3 = inlined_call_operand.vmem [shape: bf16[72,64], index: 3, kind: output, shape index: {}]  }
   0x1   :  { %v757_v0 = vld [vmem:[%s1037_s1 + $0x78] sm:$0xff]   ;;  %v761_v4 = vld [vmem:[%s1037_s1 + $0x70] sm:$0xff]   ;;  %v765_v8 = vld [vmem:[%s1037_s1 + $0x68] sm:$0xff]  }
   0x2   :  { %v758_v1 = vld [vmem:[%s1037_s1 + $0xf8] sm:$0xff]   ;;  %665 = vmatprep.subr.bf16.mxu0 %v757_v0  ;;  %v762_v5 = vld [vmem:[%s1037_s1 + $0xf0] sm:$0xff]   ;;  %v766_v9 = vld [vmem:[%s1037_s1 + $0xe8] sm:$0xff]  }
   0x3   :  { %v759_v2 = vld [vmem:[%s1037_s1 + $0x38] sm:$0xff]   ;;  %711 = vmatprep.subr.bf16.mxu1 %v758_v1  ;;  %v763_v6 = vld [vmem:[%s1037_s1 + $0x30] sm:$0xff]   ;;  %v767_v10 = vld [vmem:[%s1037_s1 + $0x28] sm:$0xff]  }
   0x4   :  { %v760_v3 = vld [vmem:[%s1037_s1 + $0xb8] sm:$0xff]   ;;  %666 = vmatpush3.bf16.msra.mxu0 %v759_v2  ;;  %v764_v7 = vld [vmem:[%s1037_s1 + $0xb0] sm:$0xff]   ;;  %v768_v11 = vld [vmem:[%s1037_s1 + $0xa8] sm:$0xff]  }
   0x5   :  { %712 = vmatpush3.bf16.msra.mxu1 %v760_v3  ;;  %667 = vmatprep.subr.bf16.mxu0 %v761_v4  ;;  %v769_v12 = vld [vmem:[%s1037_s1 + $0x60] sm:$0xff]   ;;  %v773_v16 = vld [vmem:[%s1037_s1 + $0x58] sm:$0xff]   ;;  %v777_v20 = vld [vmem:[%s1037_s1 + $0x50] sm:$0xff]  }
   0x6   :  { %713 = vmatprep.subr.bf16.mxu1 %v762_v5  ;;  %v770_v13 = vld [vmem:[%s1037_s1 + $0xe0] sm:$0xff]   ;;  %v774_v17 = vld [vmem:[%s1037_s1 + $0xd8] sm:$0xff]   ;;  %v778_v21 = vld [vmem:[%s1037_s1 + $0xd0] sm:$0xff]  }
   0x7   :  { %v771_v14 = vld [vmem:[%s1037_s1 + $0x20] sm:$0xff]   ;;  %v775_v18 = vld [vmem:[%s1037_s1 + $0x18] sm:$0xff]   ;;  %v779_v22 = vld [vmem:[%s1037_s1 + $0x10] sm:$0xff]  }
   0x8   :  { %668 = vmatpush3.bf16.msra.mxu0 %v763_v6  ;;  %v772_v15 = vld [vmem:[%s1037_s1 + $0xa0] sm:$0xff]   ;;  %v776_v19 = vld [vmem:[%s1037_s1 + $0x98] sm:$0xff]   ;;  %v780_v23 = vld [vmem:[%s1037_s1 + $0x90] sm:$0xff]  }
   0x9   :  { %714 = vmatpush3.bf16.msra.mxu1 %v764_v7  ;;  %669 = vmatprep.subr.bf16.mxu0 %v765_v8  ;;  %v781_v24 = vld [vmem:[%s1037_s1 + $0x48] sm:$0xff]   ;;  %v785_v28 = vld [vmem:[%s1037_s1 + $0x40] sm:$0xff]  }
   0xa   :  { %715 = vmatprep.subr.bf16.mxu1 %v766_v9  ;;  %v782_v25 = vld [vmem:[%s1037_s1 + $0xc8] sm:$0xff]   ;;  %v786_v29 = vld [vmem:[%s1037_s1 + $0xc0] sm:$0xff]  }
   0xb   :  { %v783_v26 = vld [vmem:[%s1037_s1 + $0x8] sm:$0xff]   ;;  %v787_v30 = vld [vmem:[%s1037_s1] sm:$0xff]  }
   0xc   :  { %670 = vmatpush3.bf16.msra.mxu0 %v767_v10  ;;  %v784_v27 = vld [vmem:[%s1037_s1 + $0x88] sm:$0xff]   ;;  %v788_v31 = vld [vmem:[%s1037_s1 + $0x80] sm:$0xff]  }
   0xd   :  { %716 = vmatpush3.bf16.msra.mxu1 %v768_v11  ;;  %671 = vmatprep.subr.bf16.mxu0 %v769_v12  ;;  %v789_v32 = vld [vmem:[%s1038_s0] ss:$16 sps:$4 sm:$0xff]   ;;  %v791_v33 = vld [vmem:[%s1038_s0 + $0x4] ss:$16 sps:$4 sm:$0xff]   ;;  %v792_v34 = vld [vmem:[%s1038_s0 + $0x8] ss:$16 sps:$4 sm:$0xff]  }
   0xe   :  { %717 = vmatprep.subr.bf16.mxu1 %v770_v13  ;;  %v794_v35 = vld [vmem:[%s1038_s0 + $0xc] ss:$16 sps:$4 sm:$0xff]   ;;  %422 = vmatprep.mubr.bf16.mxu0 %v791_v33  ;;  %v795_v36 = vld [vmem:[%s1038_s0 + $0x24] ss:$16 sps:$4 sm:$0xff]   ;;  %v799_v38 = vld [vmem:[%s1038_s0 + $0x20] ss:$16 sps:$4 sm:$0xff]  }
   0xf   :  { %494 = vmatprep.mubr.bf16.mxu1 %v794_v35  ;;  %v797_v37 = vld [vmem:[%s1038_s0 + $0x2c] ss:$16 sps:$4 sm:$0xff]   ;;  %v800_v39 = vld [vmem:[%s1038_s0 + $0x28] ss:$16 sps:$4 sm:$0xff]   ;;  %v801_v40 = vld [vmem:[%s1038_s0 + $0x44] ss:$16 sps:$4 sm:$0xff]  }
  0x10   :  { %672 = vmatpush3.bf16.msra.mxu0 %v771_v14  ;;  %v803_v41 = vld [vmem:[%s1038_s0 + $0x4c] ss:$16 sps:$4 sm:$0xff]   ;;  %v805_v42 = vld [vmem:[%s1038_s0 + $0x40] ss:$16 sps:$4 sm:$0xff]   ;;  %v806_v43 = vld [vmem:[%s1038_s0 + $0x48] ss:$16 sps:$4 sm:$0xff]  }
  0x11   :  { %718 = vmatpush3.bf16.msra.mxu1 %v772_v15  ;;  %673 = vmatprep.subr.bf16.mxu0 %v773_v16  ;;  %v807_v44 = vld [vmem:[%s1038_s0 + $0x64] ss:$16 sps:$4 sm:$0xff]   ;;  %v809_v45 = vld [vmem:[%s1038_s0 + $0x6c] ss:$16 sps:$4 sm:$0xff]   ;;  %v811_v48 = vld [vmem:[%s1038_s0 + $0x60] ss:$16 sps:$4 sm:$0xff]  }
  0x12   :  { %719 = vmatprep.subr.bf16.mxu1 %v774_v17  ;;  %v31_v46 = vld [vmem:[%s1038_s0 + $0x80] sm:$0xff]  ;;  %v32_v47 = vld [vmem:[%s1038_s0 + $0x88] sm:$0xff] }
  0x13   :  { %v812_v49 = vld [vmem:[%s1038_s0 + $0x68] ss:$16 sps:$4 sm:$0xff]   ;;  %v612_v50 = vcombine.high %v31_v46, %v31_v46  ;;  %v614_v51 = vcombine.high %v32_v47, %v32_v47  ;;  %v611_v52 = vcombine.low %v31_v46, %v31_v46  ;;  %v613_v53 = vcombine.low %v32_v47, %v32_v47  ;;  %v990_v56 = vld [vmem:[%s1039_s2] ss:$0 sm:$0xff] }
  0x14   :  { %674 = vmatpush3.bf16.msra.mxu0 %v775_v18 }
  0x15   :  { %720 = vmatpush3.bf16.msra.mxu1 %v776_v19  ;;  %675 = vmatprep.subr.bf16.mxu0 %v777_v20 }
  0x16   :  { %721 = vmatprep.subr.bf16.mxu1 %v778_v21 }
  0x18   :  { %676 = vmatpush3.bf16.msra.mxu0 %v779_v22 }
  0x19   :  { %722 = vmatpush3.bf16.msra.mxu1 %v780_v23  ;;  %677 = vmatprep.subr.bf16.mxu0 %v781_v24 }
  0x1a   :  { %723 = vmatprep.subr.bf16.mxu1 %v782_v25 }
  0x1c   :  { %678 = vmatpush3.bf16.msra.mxu0 %v783_v26 }
  0x1d   :  { %724 = vmatpush3.bf16.msra.mxu1 %v784_v27  ;;  %679 = vmatprep.subr.bf16.mxu0 %v785_v28 }
  0x1e   :  { %725 = vmatprep.subr.bf16.mxu1 %v786_v29 }
  0x20   :  { %680 = vmatpush3.bf16.msra.mxu0 %v787_v30 }
  0x21   :  { %726 = vmatpush3.bf16.msra.mxu1 %v788_v31 }
  0x23   :  { %423 = vmatmul.mubr.bf16.vlgmr.msra.gmra.mxu0 %v789_v32 }
  0x24   :  { %495 = vmatmul.mubr.bf16.vlgmr.msra.gmra.mxu1 %v792_v34  ;;  %430 = vmatprep.mubr.bf16.mxu0 %v795_v36 }
  0x25   :  { %502 = vmatprep.mubr.bf16.mxu1 %v797_v37 }
  0x2b   :  { %431 = vmatmul.mubr.bf16.gmra.mxu0 %v799_v38 }
  0x2c   :  { %503 = vmatmul.mubr.bf16.gmra.mxu1 %v800_v39  ;;  %438 = vmatprep.mubr.bf16.mxu0 %v801_v40 }
  0x2d   :  { %510 = vmatprep.mubr.bf16.mxu1 %v803_v41 }
  0x33   :  { %439 = vmatmul.mubr.bf16.gmra.mxu0 %v805_v42 }
  0x34   :  { %511 = vmatmul.mubr.bf16.gmra.mxu1 %v806_v43  ;;  %446 = vmatprep.mubr.bf16.mxu0 %v807_v44 }
  0x35   :  { %518 = vmatprep.mubr.bf16.mxu1 %v809_v45 }
  0x3b   :  { %447 = vmatmul.mubr.bf16.gmra.mxu0 %v811_v48 }
  0x3c   :  { %519 = vmatmul.mubr.bf16.gmra.mxu1 %v812_v49  ;;  %454 = vmatprep.mubr.bf16.mxu0 %v612_v50 }
  0x3d   :  { %526 = vmatprep.mubr.bf16.mxu1 %v614_v51 }
  0x43   :  { %455 = vmatmul.mubr.bf16.gmra.mxu0 %v611_v52 }
  0x44   :  { %527 = vmatmul.mubr.bf16.gmra.mxu1 %v613_v53 }
  0xe3   :  { %v681_v54 = vpop.f32.mrf.mxu0 }
  0xe4   :  { %v727_v55 = vpop.f32.mrf.mxu1 }
  0xe5   :  { %v682_v57 = vpop.f32.mrf.mxu0 }
  0xe6   :  { %v683_v58 = vadd.f32 %v682_v57, %v681_v54  ;;  %v728_v59 = vpop.f32.mrf.mxu1 }
  0xe7   :  { %v684_v60 = vpop.f32.mrf.mxu0  ;;  %v729_v62 = vadd.f32 %v728_v59, %v727_v55 }
  0xe8   :  { %v425_v61 = vadd.f32 %v683_v58, %v990_v56  ;;  %v730_v63 = vpop.f32.mrf.mxu1 }
  0xe9   :  { %v685_v0 = vpop.f32.mrf.mxu0 }
  0xea   :  { %v497_v1 = vadd.f32 %v729_v62, %v425_v61  ;;  %v686_v2 = vadd.f32 %v685_v0, %v684_v60  ;;  %v731_v3 = vpop.f32.mrf.mxu1 }
  0xeb   :  { %v687_v4 = vpop.f32.mrf.mxu0  ;;  %v732_v7 = vadd.f32 %v731_v3, %v730_v63 }
  0xec   :  { %v534_v5 = vmax.f32 %v497_v1, 0.0  ;;  %v428_v6 = vadd.f32 %v686_v2, %v990_v56  ;;  %v733_v8 = vpop.f32.mrf.mxu1 }
  0xed   :  { %v688_v9 = vpop.f32.mrf.mxu0 }
  0xee   :  { %v656_v10 = vpack.c.bf16 %v534_v5, %v534_v5  ;;  %v500_v11 = vadd.f32 %v732_v7, %v428_v6  ;;  %v689_v12 = vadd.f32 %v688_v9, %v687_v4  ;;  %v734_v13 = vpop.f32.mrf.mxu1 }
  0xef   :  { %v690_v14 = vpop.f32.mrf.mxu0  ;;  %v735_v17 = vadd.f32 %v734_v13, %v733_v8 }
  0xf0   :  { %581 = vst.msk [vmem:[%s1040_s3] sm:$0xf] %vm580_vm0, %v656_v10  ;;  %v535_v15 = vmax.f32 %v500_v11, 0.0  ;;  %v433_v16 = vadd.f32 %v689_v12, %v990_v56  ;;  %v736_v18 = vpop.f32.mrf.mxu1 }
  0xf1   :  { %v691_v19 = vpop.f32.mrf.mxu0 }
  0xf2   :  { %v657_v20 = vpack.c.bf16 %v535_v15, %v535_v15  ;;  %v505_v21 = vadd.f32 %v735_v17, %v433_v16  ;;  %v692_v22 = vadd.f32 %v691_v19, %v690_v14  ;;  %v737_v23 = vpop.f32.mrf.mxu1 }
  0xf3   :  { %v693_v24 = vpop.f32.mrf.mxu0  ;;  %v738_v27 = vadd.f32 %v737_v23, %v736_v18 }
  0xf4   :  { %582 = vst.msk [vmem:[%s1040_s3 + $0x4] sm:$0xf] %vm580_vm0, %v657_v20  ;;  %v536_v25 = vmax.f32 %v505_v21, 0.0  ;;  %v436_v26 = vadd.f32 %v692_v22, %v990_v56  ;;  %v739_v28 = vpop.f32.mrf.mxu1 }
  0xf5   :  { %v694_v29 = vpop.f32.mrf.mxu0 }
  0xf6   :  { %v658_v30 = vpack.c.bf16 %v536_v25, %v536_v25  ;;  %v508_v31 = vadd.f32 %v738_v27, %v436_v26  ;;  %v695_v32 = vadd.f32 %v694_v29, %v693_v24  ;;  %v740_v33 = vpop.f32.mrf.mxu1 }
  0xf7   :  { %v696_v34 = vpop.f32.mrf.mxu0  ;;  %v741_v37 = vadd.f32 %v740_v33, %v739_v28 }
  0xf8   :  { %583 = vst.msk [vmem:[%s1040_s3 + $0x8] sm:$0xf] %vm580_vm0, %v658_v30  ;;  %v537_v35 = vmax.f32 %v508_v31, 0.0  ;;  %v441_v36 = vadd.f32 %v695_v32, %v990_v56  ;;  %v742_v38 = vpop.f32.mrf.mxu1 }
  0xf9   :  { %v697_v39 = vpop.f32.mrf.mxu0 }
  0xfa   :  { %v659_v40 = vpack.c.bf16 %v537_v35, %v537_v35  ;;  %v513_v41 = vadd.f32 %v741_v37, %v441_v36  ;;  %v698_v42 = vadd.f32 %v697_v39, %v696_v34  ;;  %v743_v43 = vpop.f32.mrf.mxu1 }
  0xfb   :  { %v699_v44 = vpop.f32.mrf.mxu0  ;;  %v744_v47 = vadd.f32 %v743_v43, %v742_v38 }
  0xfc   :  { %584 = vst.msk [vmem:[%s1040_s3 + $0xc] sm:$0xf] %vm580_vm0, %v659_v40  ;;  %v538_v45 = vmax.f32 %v513_v41, 0.0  ;;  %v444_v46 = vadd.f32 %v698_v42, %v990_v56  ;;  %v745_v48 = vpop.f32.mrf.mxu1 }
  0xfd   :  { %v700_v49 = vpop.f32.mrf.mxu0 }
  0xfe   :  { %v660_v50 = vpack.c.bf16 %v538_v45, %v538_v45  ;;  %v516_v51 = vadd.f32 %v744_v47, %v444_v46  ;;  %v701_v52 = vadd.f32 %v700_v49, %v699_v44  ;;  %v746_v53 = vpop.f32.mrf.mxu1 }
  0xff   :  { %v702_v54 = vpop.f32.mrf.mxu0  ;;  %v747_v58 = vadd.f32 %v746_v53, %v745_v48 }
 0x100   :  { %585 = vst.msk [vmem:[%s1040_s3 + $0x10] sm:$0xf] %vm580_vm0, %v660_v50  ;;  %v539_v55 = vmax.f32 %v516_v51, 0.0  ;;  %v449_v57 = vadd.f32 %v701_v52, %v990_v56  ;;  %v748_v59 = vpop.f32.mrf.mxu1 }
 0x101   :  { %v703_v60 = vpop.f32.mrf.mxu0 }
 0x102   :  { %v661_v61 = vpack.c.bf16 %v539_v55, %v539_v55  ;;  %v521_v62 = vadd.f32 %v747_v58, %v449_v57  ;;  %v704_v63 = vadd.f32 %v703_v60, %v702_v54  ;;  %v749_v0 = vpop.f32.mrf.mxu1 }
 0x103   :  { %v705_v1 = vpop.f32.mrf.mxu0  ;;  %v750_v4 = vadd.f32 %v749_v0, %v748_v59 }
 0x104   :  { %586 = vst.msk [vmem:[%s1040_s3 + $0x14] sm:$0xf] %vm580_vm0, %v661_v61  ;;  %v540_v2 = vmax.f32 %v521_v62, 0.0  ;;  %v452_v3 = vadd.f32 %v704_v63, %v990_v56  ;;  %v751_v5 = vpop.f32.mrf.mxu1 }
 0x105   :  { %v706_v6 = vpop.f32.mrf.mxu0 }
 0x106   :  { %v662_v7 = vpack.c.bf16 %v540_v2, %v540_v2  ;;  %v524_v8 = vadd.f32 %v750_v4, %v452_v3  ;;  %v707_v9 = vadd.f32 %v706_v6, %v705_v1  ;;  %v752_v10 = vpop.f32.mrf.mxu1 }
 0x107   :  { %v708_v11 = vpop.f32.mrf.mxu0  ;;  %v753_v14 = vadd.f32 %v752_v10, %v751_v5 }
 0x108   :  { %587 = vst.msk [vmem:[%s1040_s3 + $0x18] sm:$0xf] %vm580_vm0, %v662_v7  ;;  %v541_v12 = vmax.f32 %v524_v8, 0.0  ;;  %v457_v13 = vadd.f32 %v707_v9, %v990_v56  ;;  %v754_v15 = vpop.f32.mrf.mxu1 }
 0x109   :  { %v709_v16 = vpop.f32.mrf.mxu0 }
 0x10a   :  { %v663_v17 = vpack.c.bf16 %v541_v12, %v541_v12  ;;  %v529_v18 = vadd.f32 %v753_v14, %v457_v13  ;;  %v755_v19 = vpop.f32.mrf.mxu1 }
 0x10c   :  { %588 = vst.msk [vmem:[%s1040_s3 + $0x1c] sm:$0xf] %vm580_vm0, %v663_v17  ;;  %v542_v20 = vmax.f32 %v529_v18, 0.0 }
 0x10e   :  { %v664_v21 = vpack.c.bf16 %v542_v20, %v542_v20 }
 0x110   :  { %589 = vst.msk [vmem:[%s1040_s3 + $0x20] sm:$0xf] %vm580_vm0, %v664_v21 }

// kernel: dqn_conv_forward.6
= control target key start
LH: loop header
LB: loop body
LE: loop exit
PB: predicated region body
PF: predicated region fallthrough
CT: control target
= control target key end

     0   :  { %vm372_vm0 = vcmask 523264   ;;  %vm546_vm1 = vcmask 519168   ;;  %s913_s1 = inlined_call_operand.vmem [shape: bf16[576,64], index: 1, kind: input, shape index: {}]   ;;  %s914_s0 = inlined_call_operand.vmem [shape: bf16[32,576], index: 0, kind: input, shape index: {}]   ;;  %s915_s2 = inlined_call_operand.vmem [shape: f32[1,64], index: 2, kind: input, shape index: {}]   ;;  %s916_s3 = inlined_call_operand.vmem [shape: bf16[32,64], index: 3, kind: output, shape index: {}]  }
   0x1   :  { %v686_v0 = vld [vmem:[%s913_s1 + $0x78] sm:$0xff]   ;;  %v690_v4 = vld [vmem:[%s913_s1 + $0x70] sm:$0xff]   ;;  %v694_v8 = vld [vmem:[%s913_s1 + $0x68] sm:$0xff]  }
   0x2   :  { %v687_v1 = vld [vmem:[%s913_s1 + $0xf8] sm:$0xff]   ;;  %612 = vmatprep.subr.bf16.mxu0 %v686_v0  ;;  %v691_v5 = vld [vmem:[%s913_s1 + $0xf0] sm:$0xff]   ;;  %v695_v9 = vld [vmem:[%s913_s1 + $0xe8] sm:$0xff]  }
   0x3   :  { %v688_v2 = vld [vmem:[%s913_s1 + $0x38] sm:$0xff]   ;;  %640 = vmatprep.subr.bf16.mxu1 %v687_v1  ;;  %v692_v6 = vld [vmem:[%s913_s1 + $0x30] sm:$0xff]   ;;  %v696_v10 = vld [vmem:[%s913_s1 + $0x28] sm:$0xff]  }
   0x4   :  { %v689_v3 = vld [vmem:[%s913_s1 + $0xb8] sm:$0xff]   ;;  %613 = vmatpush3.bf16.msra.mxu0 %v688_v2  ;;  %v693_v7 = vld [vmem:[%s913_s1 + $0xb0] sm:$0xff]   ;;  %v697_v11 = vld [vmem:[%s913_s1 + $0xa8] sm:$0xff]  }
   0x5   :  { %641 = vmatpush3.bf16.msra.mxu1 %v689_v3  ;;  %614 = vmatprep.subr.bf16.mxu0 %v690_v4  ;;  %v698_v12 = vld [vmem:[%s913_s1 + $0x60] sm:$0xff]   ;;  %v702_v16 = vld [vmem:[%s913_s1 + $0x58] sm:$0xff]   ;;  %v706_v20 = vld [vmem:[%s913_s1 + $0x50] sm:$0xff]  }
   0x6   :  { %642 = vmatprep.subr.bf16.mxu1 %v691_v5  ;;  %v699_v13 = vld [vmem:[%s913_s1 + $0xe0] sm:$0xff]   ;;  %v703_v17 = vld [vmem:[%s913_s1 + $0xd8] sm:$0xff]   ;;  %v707_v21 = vld [vmem:[%s913_s1 + $0xd0] sm:$0xff]  }
   0x7   :  { %v700_v14 = vld [vmem:[%s913_s1 + $0x20] sm:$0xff]   ;;  %v704_v18 = vld [vmem:[%s913_s1 + $0x18] sm:$0xff]   ;;  %v708_v22 = vld [vmem:[%s913_s1 + $0x10] sm:$0xff]  }
   0x8   :  { %615 = vmatpush3.bf16.msra.mxu0 %v692_v6  ;;  %v701_v15 = vld [vmem:[%s913_s1 + $0xa0] sm:$0xff]   ;;  %v705_v19 = vld [vmem:[%s913_s1 + $0x98] sm:$0xff]   ;;  %v709_v23 = vld [vmem:[%s913_s1 + $0x90] sm:$0xff]  }
   0x9   :  { %643 = vmatpush3.bf16.msra.mxu1 %v693_v7  ;;  %616 = vmatprep.subr.bf16.mxu0 %v694_v8  ;;  %v710_v24 = vld [vmem:[%s913_s1 + $0x48] sm:$0xff]   ;;  %v714_v28 = vld [vmem:[%s913_s1 + $0x40] sm:$0xff]   ;;  %v724_v36 = vld [vmem:[%s913_s1 + $0x118] sm:$0xff]  }
   0xa   :  { %644 = vmatprep.subr.bf16.mxu1 %v695_v9  ;;  %v711_v25 = vld [vmem:[%s913_s1 + $0xc8] sm:$0xff]   ;;  %v715_v29 = vld [vmem:[%s913_s1 + $0xc0] sm:$0xff]   ;;  %v725_v37 = vld [vmem:[%s913_s1 + $0x110] sm:$0xff]  }
   0xb   :  { %v712_v26 = vld [vmem:[%s913_s1 + $0x8] sm:$0xff]   ;;  %v716_v30 = vld [vmem:[%s913_s1] sm:$0xff]  }
   0xc   :  { %617 = vmatpush3.bf16.msra.mxu0 %v696_v10  ;;  %v713_v27 = vld [vmem:[%s913_s1 + $0x88] sm:$0xff]   ;;  %v717_v31 = vld [vmem:[%s913_s1 + $0x80] sm:$0xff]  }
   0xd   :  { %645 = vmatpush3.bf16.msra.mxu1 %v697_v11  ;;  %618 = vmatprep.subr.bf16.mxu0 %v698_v12  ;;  %v718_v32 = vld [vmem:[%s914_s0] ss:$20 sps:$4 sm:$0xff]   ;;  %v720_v33 = vld [vmem:[%s914_s0 + $0x4] ss:$20 sps:$4 sm:$0xff]   ;;  %v721_v34 = vld [vmem:[%s914_s0 + $0x8] ss:$20 sps:$4 sm:$0xff]  }
   0xe   :  { %646 = vmatprep.subr.bf16.mxu1 %v699_v13  ;;  %v723_v35 = vld [vmem:[%s914_s0 + $0xc] ss:$20 sps:$4 sm:$0xff]   ;;  %411 = vmatprep.mubr.bf16.mxu0 %v720_v33  ;;  %v728_v39 = vld [vmem:[%s914_s0 + $0x34] ss:$20 sps:$4 sm:$0xff]   ;;  %v731_v42 = vld [vmem:[%s914_s0 + $0x30] ss:$20 sps:$4 sm:$0xff]  }
   0xf   :  { %460 = vmatprep.mubr.bf16.mxu1 %v723_v35  ;;  %v726_v38 = vld [vmem:[%s914_s0 + $0x2c] ss:$20 sps:$4 sm:$0xff]   ;;  %v730_v40 = vld [vmem:[%s914_s0 + $0x28] ss:$20 sps:$4 sm:$0xff]   ;;  %v734_v43 = vld [vmem:[%s914_s0 + $0x10] ss:$20 sps:$4 sm:$0xff]  }
  0x10   :  { %619 = vmatpush3.bf16.msra.mxu0 %v700_v14  ;;  %v732_v41 = vld [vmem:[%s913_s1 + $0x108] sm:$0xff]   ;;  %v733_v44 = vld [vmem:[%s913_s1 + $0x100] sm:$0xff]  }
  0x11   :  { %647 = vmatpush3.bf16.msra.mxu1 %v701_v15  ;;  %620 = vmatprep.subr.bf16.mxu0 %v702_v16  ;;  %v735_v45 = vld [vmem:[%s914_s0 + $0x38] ss:$20 sps:$4 sm:$0xff]   ;;  %v555_v58 = vld [vmem:[%s915_s2] ss:$0 sm:$0xff] }
  0x12   :  { %648 = vmatprep.subr.bf16.mxu1 %v703_v17 }
  0x14   :  { %621 = vmatpush3.bf16.msra.mxu0 %v704_v18 }
  0x15   :  { %649 = vmatpush3.bf16.msra.mxu1 %v705_v19  ;;  %622 = vmatprep.subr.bf16.mxu0 %v706_v20 }
  0x16   :  { %650 = vmatprep.subr.bf16.mxu1 %v707_v21 }
  0x18   :  { %623 = vmatpush3.bf16.msra.mxu0 %v708_v22 }
  0x19   :  { %651 = vmatpush3.bf16.msra.mxu1 %v709_v23  ;;  %624 = vmatprep.subr.bf16.mxu0 %v710_v24 }
  0x1a   :  { %652 = vmatprep.subr.bf16.mxu1 %v711_v25 }
  0x1c   :  { %625 = vmatpush3.bf16.msra.mxu0 %v712_v26 }
  0x1d   :  { %653 = vmatpush3.bf16.msra.mxu1 %v713_v27  ;;  %626 = vmatprep.subr.bf16.mxu0 %v714_v28 }
  0x1e   :  { %654 = vmatprep.subr.bf16.mxu1 %v715_v29 }
  0x20   :  { %627 = vmatpush3.bf16.msra.mxu0 %v716_v30 }
  0x21   :  { %655 = vmatpush3.bf16.msra.mxu1 %v717_v31  ;;  %674 = vmatprep.subr.bf16.mxu0 %v724_v36 }
  0x23   :  { %412 = vmatmul.mubr.bf16.vlgmr.msra.gmra.mxu0 %v718_v32 }
  0x24   :  { %461 = vmatmul.mubr.bf16.vlgmr.msra.gmra.mxu1 %v721_v34  ;;  %675 = vmatpush3.bf16.msra.mxu0 %v724_v36 }
  0x25   :  { %676 = vmatprep.subr.bf16.mxu0 %v725_v37  ;;  %419 = vmatprep.mubr.bf16.mxu0 %v726_v38 }
  0x26   :  { %468 = vmatprep.mubr.bf16.mxu1 %v728_v39 }
  0x28   :  { %677 = vmatpush3.bf16.msra.mxu0 %v725_v37 }
  0x29   :  { %678 = vmatprep.subr.bf16.mxu0 %v732_v41 }
  0x2b   :  { %420 = vmatmul.mubr.bf16.gmra.mxu0 %v730_v40 }
  0x2c   :  { %469 = vmatmul.mubr.bf16.gmra.mxu1 %v731_v42  ;;  %682 = vmatprep.mubr.msk.bf16.mxu0 %vm372_vm0, %v734_v43 }
  0x2d   :  { %679 = vmatpush3.bf16.msra.mxu0 %v732_v41 }
  0x2e   :  { %680 = vmatprep.subr.bf16.mxu0 %v733_v44 }
  0x31   :  { %681 = vmatpush3.bf16.msra.mxu0 %v733_v44 }
  0x34   :  { %683 = vmatmul.mubr.msk.bf16.vlgmr.msra.gmra.mxu0 %vm372_vm0, %v735_v45 }
  0xe3   :  { %v628_v46 = vpop.f32.mrf.mxu0 }
  0xe4   :  { %v656_v47 = vpop.f32.mrf.mxu1 }
  0xe5   :  { %v629_v48 = vpop.f32.mrf.mxu0 }
  0xe6   :  { %v657_v49 = vpop.f32.mrf.mxu1  ;;  %v630_v56 = vadd.f32 %v629_v48, %v628_v46 }
  0xe7   :  { %v631_v50 = vpop.f32.mrf.mxu0  ;;  %v658_v2 = vadd.f32 %v657_v49, %v656_v47 }
  0xe8   :  { %v659_v51 = vpop.f32.mrf.mxu1  ;;  %v414_v1 = vadd.f32 %v630_v56, %v555_v58 }
  0xe9   :  { %v632_v52 = vpop.f32.mrf.mxu0 }
  0xea   :  { %v660_v53 = vpop.f32.mrf.mxu1  ;;  %v633_v3 = vadd.f32 %v632_v52, %v631_v50  ;;  %v463_v13 = vadd.f32 %v658_v2, %v414_v1 }
  0xeb   :  { %v634_v54 = vpop.f32.mrf.mxu0  ;;  %v661_v16 = vadd.f32 %v660_v53, %v659_v51 }
  0xec   :  { %v662_v55 = vpop.f32.mrf.mxu1  ;;  %v417_v11 = vadd.f32 %v633_v3, %v555_v58 }
  0xed   :  { %v635_v57 = vpop.f32.mrf.mxu0 }
  0xee   :  { %v636_v59 = vadd.f32 %v635_v57, %v634_v54  ;;  %v663_v60 = vpop.f32.mrf.mxu1  ;;  %v466_v23 = vadd.f32 %v661_v16, %v417_v11 }
  0xef   :  { %v664_v61 = vadd.f32 %v663_v60, %v662_v55  ;;  %v637_v62 = vpop.f32.mrf.mxu0 }
  0xf0   :  { %v422_v63 = vadd.f32 %v636_v59, %v555_v58  ;;  %v665_v0 = vpop.f32.mrf.mxu1 }
  0xf1   :  { %v638_v4 = vpop.f32.mrf.mxu0 }
  0xf2   :  { %v639_v5 = vadd.f32 %v638_v4, %v637_v62  ;;  %v666_v6 = vpop.f32.mrf.mxu1  ;;  %v471_v7 = vadd.f32 %v664_v61, %v422_v63 }
  0xf3   :  { %v667_v9 = vadd.f32 %v666_v6, %v665_v0 }
  0xf4   :  { %v425_v8 = vadd.f32 %v639_v5, %v555_v58  ;;  %v684_v10 = vpop.f32.mrf.mxu0 }
  0xf5   :  { %v520_v12 = vadd.f32 %v684_v10, %v471_v7 }
  0xf6   :  { %v511_v14 = vpop.f32.mrf.mxu0  ;;  %v474_v15 = vadd.f32 %v667_v9, %v425_v8 }
  0xf7   :  { %v528_v17 = vmax.f32 %v520_v12, 0.0  ;;  %v512_v18 = vadd.f32 %v511_v14, %v463_v13 }
  0xf8   :  { %v685_v19 = vpop.f32.mrf.mxu0 }
  0xf9   :  { %v610_v20 = vpack.c.bf16 %v528_v17, %v528_v17  ;;  %v526_v21 = vmax.f32 %v512_v18, 0.0  ;;  %v523_v22 = vadd.f32 %v685_v19, %v474_v15 }
  0xfa   :  { %v514_v24 = vpop.f32.mrf.mxu0 }
  0xfb   :  { %549 = vst.msk [vmem:[%s916_s3 + $0x8] sm:$0xf] %vm546_vm1, %v610_v20  ;;  %v608_v25 = vpack.c.bf16 %v526_v21, %v526_v21  ;;  %v529_v26 = vmax.f32 %v523_v22, 0.0  ;;  %v515_v27 = vadd.f32 %v514_v24, %v466_v23 }
  0xfd   :  { %547 = vst.msk [vmem:[%s916_s3] sm:$0xf] %vm546_vm1, %v608_v25  ;;  %v611_v28 = vpack.c.bf16 %v529_v26, %v529_v26  ;;  %v527_v29 = vmax.f32 %v515_v27, 0.0 }
  0xff   :  { %550 = vst.msk [vmem:[%s916_s3 + $0xc] sm:$0xf] %vm546_vm1, %v611_v28  ;;  %v609_v30 = vpack.c.bf16 %v527_v29, %v527_v29 }
 0x101   :  { %548 = vst.msk [vmem:[%s916_s3 + $0x4] sm:$0xf] %vm546_vm1, %v609_v30 }

// kernel: dqn_conv_forward.7
= control target key start
LH: loop header
LB: loop body
LE: loop exit
PB: predicated region body
PF: predicated region fallthrough
CT: control target
= control target key end

     0   :  { %vm1202_vm0 = vmmov 0   ;;  %vm779_vm1 = vcmask 523264   ;;  %s1485_s1 = inlined_call_operand.vmem [shape: bf16[1024,64], index: 1, kind: input, shape index: {}]   ;;  %s1486_s0 = inlined_call_operand.vmem [shape: bf16[8,1024], index: 0, kind: input, shape index: {}]   ;;  %s1487_s3 = inlined_call_operand.vmem [shape: bf16[64,64], index: 3, kind: input, shape index: {}]   ;;  %s1488_s5 = inlined_call_operand.vmem [shape: bf16[64,128], index: 5, kind: input, shape index: {}]   ;;  %s1489_s2 = inlined_call_operand.vmem [shape: f32[1,64], index: 2, kind: input, shape index: {}]   ;;  %s1490_s4 = inlined_call_operand.vmem [shape: f32[1,64], index: 4, kind: input, shape index: {}]   ;;  %s1491_s6 = inlined_call_operand.vmem [shape: f32[1,128], index: 6, kind: input, shape index: {}]   ;;  %s1492_s7 = inlined_call_operand.vmem [shape: f32[8,128], index: 7, kind: output, shape index: {}]  }
   0x1   :  { %v1121_v0 = vld [vmem:[%s1485_s1 + $0x78] sm:$0xff]   ;;  %v1125_v4 = vld [vmem:[%s1485_s1 + $0x70] sm:$0xff]   ;;  %v1129_v8 = vld [vmem:[%s1485_s1 + $0x68] sm:$0xff]  }
   0x2   :  { %v1122_v1 = vld [vmem:[%s1485_s1 + $0xf8] sm:$0xff]   ;;  %997 = vmatprep.subr.bf16.mxu0 %v1121_v0  ;;  %v1126_v5 = vld [vmem:[%s1485_s1 + $0xf0] sm:$0xff]   ;;  %v1130_v9 = vld [vmem:[%s1485_s1 + $0xe8] sm:$0xff]  }
   0x3   :  { %v1123_v2 = vld [vmem:[%s1485_s1 + $0x38] sm:$0xff]   ;;  %1019 = vmatprep.subr.bf16.mxu1 %v1122_v1  ;;  %v1127_v6 = vld [vmem:[%s1485_s1 + $0x30] sm:$0xff]   ;;  %v1131_v10 = vld [vmem:[%s1485_s1 + $0x28] sm:$0xff]  }
   0x4   :  { %v1124_v3 = vld [vmem:[%s1485_s1 + $0xb8] sm:$0xff]   ;;  %998 = vmatpush3.bf16.msra.mxu0 %v1123_v2  ;;  %v1128_v7 = vld [vmem:[%s1485_s1 + $0xb0] sm:$0xff]   ;;  %v1132_v11 = vld [vmem:[%s1485_s1 + $0xa8] sm:$0xff]  }
   0x5   :  { %1020 = vmatpush3.bf16.msra.mxu1 %v1124_v3  ;;  %999 = vmatprep.subr.bf16.mxu0 %v1125_v4  ;;  %v1133_v12 = vld [vmem:[%s1485_s1 + $0x60] sm:$0xff]   ;;  %v1137_v16 = vld [vmem:[%s1485_s1 + $0x58] sm:$0xff]   ;;  %v1141_v20 = vld [vmem:[%s1485_s1 + $0x50] sm:$0xff]  }
   0x6   :  { %1021 = vmatprep.subr.bf16.mxu1 %v1126_v5  ;;  %v1134_v13 = vld [vmem:[%s1485_s1 + $0xe0] sm:$0xff]   ;;  %v1138_v17 = vld [vmem:[%s1485_s1 + $0xd8] sm:$0xff]   ;;  %v1142_v21 = vld [vmem:[%s1485_s1 + $0xd0] sm:$0xff]  }
   0x7   :  { %v1135_v14 = vld [vmem:[%s1485_s1 + $0x20] sm:$0xff]   ;;  %v1139_v18 = vld [vmem:[%s1485_s1 + $0x18] sm:$0xff]   ;;  %v1143_v22 = vld [vmem:[%s1485_s1 + $0x10] sm:$0xff]  }
   0x8   :  { %1000 = vmatpush3.bf16.msra.mxu0 %v1127_v6  ;;  %v1136_v15 = vld [vmem:[%s1485_s1 + $0xa0] sm:$0xff]   ;;  %v1140_v19 = vld [vmem:[%s1485_s1 + $0x98] sm:$0xff]   ;;  %v1144_v23 = vld [vmem:[%s1485_s1 + $0x90] sm:$0xff]  }
   0x9   :  { %1022 = vmatpush3.bf16.msra.mxu1 %v1128_v7  ;;  %1001 = vmatprep.subr.bf16.mxu0 %v1129_v8  ;;  %v1145_v24 = vld [vmem:[%s1485_s1 + $0x48] sm:$0xff]   ;;  %v1149_v28 = vld [vmem:[%s1485_s1 + $0x40] sm:$0xff]   ;;  %v1157_v38 = vld [vmem:[%s1485_s1 + $0x178] sm:$0xff]  }
   0xa   :  { %1023 = vmatprep.subr.bf16.mxu1 %v1130_v9  ;;  %v1146_v25 = vld [vmem:[%s1485_s1 + $0xc8] sm:$0xff]   ;;  %v1150_v29 = vld [vmem:[%s1485_s1 + $0xc0] sm:$0xff]   ;;  %v1158_v39 = vld [vmem:[%s1485_s1 + $0x1f8] sm:$0xff]  }
   0xb   :  { %v1147_v26 = vld [vmem:[%s1485_s1 + $0x8] sm:$0xff]   ;;  %v1151_v30 = vld [vmem:[%s1485_s1] sm:$0xff]   ;;  %v1159_v40 = vld [vmem:[%s1485_s1 + $0x138] sm:$0xff]  }
   0xc   :  { %1002 = vmatpush3.bf16.msra.mxu0 %v1131_v10  ;;  %v1148_v27 = vld [vmem:[%s1485_s1 + $0x88] sm:$0xff]   ;;  %v1152_v31 = vld [vmem:[%s1485_s1 + $0x80] sm:$0xff]   ;;  %v1160_v41 = vld [vmem:[%s1485_s1 + $0x1b8] sm:$0xff]  }
   0xd   :  { %1024 = vmatpush3.bf16.msra.mxu1 %v1132_v11  ;;  %1003 = vmatprep.subr.bf16.mxu0 %v1133_v12  ;;  %v27_v32 = vld [vmem:[%s1486_s0] sm:$0xff]  ;;  %v28_v33 = vld [vmem:[%s1486_s0 + $0x8] sm:$0xff]  ;;  %v1161_v42 = vld [vmem:[%s1485_s1 + $0x170] sm:$0xff]   ;;  %v1201_v12 = vmov 0.0  }
   0xe   :  { %1025 = vmatprep.subr.bf16.mxu1 %v1134_v13  ;;  %v913_v34 = vcombine.low %v27_v32, %v27_v32  ;;  %v914_v35 = vcombine.high %v27_v32, %v27_v32  ;;  %v915_v36 = vcombine.low %v28_v33, %v28_v33  ;;  %v916_v37 = vcombine.high %v28_v33, %v28_v33  ;;  %v1162_v43 = vld [vmem:[%s1485_s1 + $0x1f0] sm:$0xff]   ;;  %v1165_v46 = vld [vmem:[%s1485_s1 + $0x168] sm:$0xff]   ;;  %v1169_v50 = vld [vmem:[%s1485_s1 + $0x160] sm:$0xff]  }
   0xf   :  { %v1163_v44 = vld [vmem:[%s1485_s1 + $0x130] sm:$0xff]   ;;  %v1166_v47 = vld [vmem:[%s1485_s1 + $0x1e8] sm:$0xff]   ;;  %v1170_v51 = vld [vmem:[%s1485_s1 + $0x1e0] sm:$0xff]  }
  0x10   :  { %1004 = vmatpush3.bf16.msra.mxu0 %v1135_v14  ;;  %610 = vmatprep.mubr.bf16.mxu0 %v914_v35  ;;  %v1164_v45 = vld [vmem:[%s1485_s1 + $0x1b0] sm:$0xff]   ;;  %v1167_v48 = vld [vmem:[%s1485_s1 + $0x128] sm:$0xff]   ;;  %v1171_v52 = vld [vmem:[%s1485_s1 + $0x120] sm:$0xff]  }
  0x11   :  { %1026 = vmatpush3.bf16.msra.mxu1 %v1136_v15  ;;  %1005 = vmatprep.subr.bf16.mxu0 %v1137_v16  ;;  %v1168_v49 = vld [vmem:[%s1485_s1 + $0x1a8] sm:$0xff]   ;;  %v1172_v53 = vld [vmem:[%s1485_s1 + $0x1a0] sm:$0xff]   ;;  %v1173_v54 = vld [vmem:[%s1485_s1 + $0x158] sm:$0xff]  }
  0x12   :  { %1027 = vmatprep.subr.bf16.mxu1 %v1138_v17  ;;  %650 = vmatprep.mubr.bf16.mxu1 %v916_v37  ;;  %v1174_v55 = vld [vmem:[%s1485_s1 + $0x1d8] sm:$0xff]   ;;  %v1177_v58 = vld [vmem:[%s1485_s1 + $0x150] sm:$0xff]   ;;  %v1181_v62 = vld [vmem:[%s1485_s1 + $0x148] sm:$0xff]  }
  0x13   :  { %v1175_v56 = vld [vmem:[%s1485_s1 + $0x118] sm:$0xff]   ;;  %v1178_v59 = vld [vmem:[%s1485_s1 + $0x1d0] sm:$0xff]   ;;  %v1182_v63 = vld [vmem:[%s1485_s1 + $0x1c8] sm:$0xff]  }
  0x14   :  { %1006 = vmatpush3.bf16.msra.mxu0 %v1139_v18  ;;  %v1176_v57 = vld [vmem:[%s1485_s1 + $0x198] sm:$0xff]   ;;  %v1179_v60 = vld [vmem:[%s1485_s1 + $0x110] sm:$0xff]   ;;  %v1183_v0 = vld [vmem:[%s1485_s1 + $0x108] sm:$0xff]  }
  0x15   :  { %1028 = vmatpush3.bf16.msra.mxu1 %v1140_v19  ;;  %1007 = vmatprep.subr.bf16.mxu0 %v1141_v20  ;;  %v1180_v61 = vld [vmem:[%s1485_s1 + $0x190] sm:$0xff]   ;;  %v1184_v1 = vld [vmem:[%s1485_s1 + $0x188] sm:$0xff]   ;;  %v1185_v2 = vld [vmem:[%s1485_s1 + $0x140] sm:$0xff]  }
  0x16   :  { %1029 = vmatprep.subr.bf16.mxu1 %v1142_v21  ;;  %v1186_v3 = vld [vmem:[%s1485_s1 + $0x1c0] sm:$0xff]   ;;  %v29_v6 = vld [vmem:[%s1486_s0 + $0x10] sm:$0xff]  ;;  %v30_v9 = vld [vmem:[%s1486_s0 + $0x18] sm:$0xff] }
  0x17   :  { %v1187_v4 = vld [vmem:[%s1485_s1 + $0x100] sm:$0xff]   ;;  %v917_v7 = vcombine.low %v29_v6, %v29_v6  ;;  %v918_v8 = vcombine.high %v29_v6, %v29_v6  ;;  %v919_v10 = vcombine.low %v30_v9, %v30_v9  ;;  %v920_v11 = vcombine.high %v30_v9, %v30_v9  ;;  %v1193_v13 = vld [vmem:[%s1487_s3 + $0x18] sm:$0xff]   ;;  %v1194_v14 = vld [vmem:[%s1487_s3 + $0x10] sm:$0xff]  }
  0x18   :  { %1008 = vmatpush3.bf16.msra.mxu0 %v1143_v22  ;;  %v1188_v5 = vld [vmem:[%s1485_s1 + $0x180] sm:$0xff]   ;;  %v1195_v15 = vld [vmem:[%s1487_s3 + $0x8] sm:$0xff]   ;;  %v1197_v17 = vld [vmem:[%s1488_s5 + $0x18] sm:$0xff]  }
  0x19   :  { %1030 = vmatpush3.bf16.msra.mxu1 %v1144_v23  ;;  %1009 = vmatprep.subr.bf16.mxu0 %v1145_v24  ;;  %v1196_v16 = vld [vmem:[%s1487_s3] sm:$0xff]   ;;  %v1198_v18 = vld [vmem:[%s1488_s5 + $0x10] sm:$0xff]  }
  0x1a   :  { %1031 = vmatprep.subr.bf16.mxu1 %v1146_v25 }
  0x1c   :  { %1010 = vmatpush3.bf16.msra.mxu0 %v1147_v26 }
  0x1d   :  { %1032 = vmatpush3.bf16.msra.mxu1 %v1148_v27  ;;  %1011 = vmatprep.subr.bf16.mxu0 %v1149_v28  ;;  %v912_v28 = vld [vmem:[%s1489_s2] ss:$0 sm:$0xff] }
  0x1e   :  { %1033 = vmatprep.subr.bf16.mxu1 %v1150_v29 }
  0x20   :  { %1012 = vmatpush3.bf16.msra.mxu0 %v1151_v30 }
  0x21   :  { %1034 = vmatpush3.bf16.msra.mxu1 %v1152_v31  ;;  %1041 = vmatprep.subr.bf16.mxu0 %v1157_v38 }
  0x22   :  { %1063 = vmatprep.subr.bf16.mxu1 %v1158_v39 }
  0x23   :  { %611 = vmatmul.mubr.bf16.vlgmr.msra.gmra.mxu0 %v913_v34 }
  0x24   :  { %651 = vmatmul.mubr.bf16.vlgmr.msra.gmra.mxu1 %v915_v36  ;;  %1042 = vmatpush3.bf16.msra.mxu0 %v1159_v40 }
  0x25   :  { %1064 = vmatpush3.bf16.msra.mxu1 %v1160_v41  ;;  %1043 = vmatprep.subr.bf16.mxu0 %v1161_v42 }
  0x26   :  { %1065 = vmatprep.subr.bf16.mxu1 %v1162_v43  ;;  %690 = vmatprep.mubr.bf16.mxu0 %v918_v8 }
  0x27   :  { %730 = vmatprep.mubr.bf16.mxu1 %v920_v11 }
  0x28   :  { %1044 = vmatpush3.bf16.msra.mxu0 %v1163_v44 }
  0x29   :  { %1066 = vmatpush3.bf16.msra.mxu1 %v1164_v45  ;;  %1045 = vmatprep.subr.bf16.mxu0 %v1165_v46  ;;  %v1199_v46 = vld [vmem:[%s1488_s5 + $0x8] sm:$0xff]  }
  0x2a   :  { %1067 = vmatprep.subr.bf16.mxu1 %v1166_v47  ;;  %v1200_v47 = vld [vmem:[%s1488_s5] sm:$0xff]  }
  0x2c   :  { %1046 = vmatpush3.bf16.msra.mxu0 %v1167_v48  ;;  %v985_v48 = vld [vmem:[%s1490_s4] ss:$0 sm:$0xff] }
  0x2d   :  { %1068 = vmatpush3.bf16.msra.mxu1 %v1168_v49  ;;  %1047 = vmatprep.subr.bf16.mxu0 %v1169_v50 }
  0x2e   :  { %1069 = vmatprep.subr.bf16.mxu1 %v1170_v51 }
  0x30   :  { %1048 = vmatpush3.bf16.msra.mxu0 %v1171_v52 }
  0x31   :  { %1070 = vmatpush3.bf16.msra.mxu1 %v1172_v53  ;;  %1049 = vmatprep.subr.bf16.mxu0 %v1173_v54 }
  0x32   :  { %1071 = vmatprep.subr.bf16.mxu1 %v1174_v55 }
  0x34   :  { %1050 = vmatpush3.bf16.msra.mxu0 %v1175_v56  ;;  %v991_v56 = vld [vmem:[%s1491_s6] ss:$0 sm:$0xff] }
  0x35   :  { %1072 = vmatpush3.bf16.msra.mxu1 %v1176_v57  ;;  %1051 = vmatprep.subr.bf16.mxu0 %v1177_v58 }
  0x36   :  { %1073 = vmatprep.subr.bf16.mxu1 %v1178_v59 }
  0x38   :  { %1052 = vmatpush3.bf16.msra.mxu0 %v1179_v60 }
  0x39   :  { %1074 = vmatpush3.bf16.msra.mxu1 %v1180_v61  ;;  %1053 = vmatprep.subr.bf16.mxu0 %v1181_v62 }
  0x3a   :  { %1075 = vmatprep.subr.bf16.mxu1 %v1182_v63 }
  0x3c   :  { %1054 = vmatpush3.bf16.msra.mxu0 %v1183_v0 }
  0x3d   :  { %1076 = vmatpush3.bf16.msra.mxu1 %v1184_v1  ;;  %1055 = vmatprep.subr.bf16.mxu0 %v1185_v2 }
  0x3e   :  { %1077 = vmatprep.subr.bf16.mxu1 %v1186_v3 }
  0x40   :  { %1056 = vmatpush3.bf16.msra.mxu0 %v1187_v4 }
  0x41   :  { %1078 = vmatpush3.bf16.msra.mxu1 %v1188_v5  ;;  %1095 = vmatprep.subr.bf16.mxu0 %v1201_v12 }
  0x42   :  { %1107 = vmatprep.subr.bf16.mxu1 %v1201_v12 }
  0x43   :  { %691 = vmatmul.mubr.bf16.vlgmr.msra.gmra.mxu0 %v917_v7 }
  0x44   :  { %731 = vmatmul.mubr.bf16.vlgmr.msra.gmra.mxu1 %v919_v10  ;;  %1096 = vmatpush3.bf16.msra.mxu0 %v1193_v13 }
  0x45   :  { %1097 = vmatprep.subr.bf16.mxu0 %v1201_v12  ;;  %1103 = vmatprep.mubr.msk.bf16.mxu0 %vm1202_vm0, %v1201_v12 }
  0x46   :  { %1115 = vmatprep.mubr.msk.bf16.mxu1 %vm1202_vm0, %v1201_v12  ;;  %1108 = vmatpush3.bf16.msra.mxu1 %v1197_v17 }
  0x47   :  { %1109 = vmatprep.subr.bf16.mxu1 %v1201_v12 }
  0x48   :  { %1098 = vmatpush3.bf16.msra.mxu0 %v1194_v14 }
  0x49   :  { %1099 = vmatprep.subr.bf16.mxu0 %v1201_v12 }
  0x4a   :  { %1110 = vmatpush3.bf16.msra.mxu1 %v1198_v18 }
  0x4b   :  { %1111 = vmatprep.subr.bf16.mxu1 %v1201_v12 }
  0x4c   :  { %1100 = vmatpush3.bf16.msra.mxu0 %v1195_v15 }
  0x4d   :  { %1101 = vmatprep.subr.bf16.mxu0 %v1201_v12 }
  0x4e   :  { %1112 = vmatpush3.bf16.msra.mxu1 %v1199_v46 }
  0x4f   :  { %1113 = vmatprep.subr.bf16.mxu1 %v1201_v12 }
  0x50   :  { %1102 = vmatpush3.bf16.msra.mxu0 %v1196_v16 }
  0x52   :  { %1114 = vmatpush3.bf16.msra.mxu1 %v1200_v47 }
  0xe3   :  { %v1013_v19 = vpop.f32.mrf.mxu0 }
  0xe4   :  { %v1035_v20 = vpop.f32.mrf.mxu1 }
  0xe5   :  { %v1014_v21 = vpop.f32.mrf.mxu0 }
  0xe6   :  { %v1036_v22 = vpop.f32.mrf.mxu1  ;;  %v1015_v27 = vadd.f32 %v1014_v21, %v1013_v19 }
  0xe7   :  { %v1016_v23 = vpop.f32.mrf.mxu0  ;;  %v1037_v30 = vadd.f32 %v1036_v22, %v1035_v20 }
  0xe8   :  { %v1038_v24 = vpop.f32.mrf.mxu1  ;;  %v613_v29 = vadd.f32 %v1015_v27, %v912_v28 }
  0xe9   :  { %v1017_v25 = vpop.f32.mrf.mxu0 }
  0xea   :  { %v1039_v26 = vpop.f32.mrf.mxu1  ;;  %v653_v35 = vadd.f32 %v1037_v30, %v613_v29 }
 0x103   :  { %v1057_v31 = vpop.f32.mrf.mxu0 }
 0x104   :  { %v1079_v32 = vpop.f32.mrf.mxu1 }
 0x105   :  { %v1058_v33 = vpop.f32.mrf.mxu0 }
 0x106   :  { %v1080_v34 = vpop.f32.mrf.mxu1  ;;  %v1059_v36 = vadd.f32 %v1058_v33, %v1057_v31 }
 0x107   :  { %v1060_v37 = vpop.f32.mrf.mxu0  ;;  %v1081_v40 = vadd.f32 %v1080_v34, %v1079_v32 }
 0x108   :  { %v1082_v38 = vpop.f32.mrf.mxu1  ;;  %v693_v39 = vadd.f32 %v1059_v36, %v653_v35 }
 0x109   :  { %v1061_v41 = vpop.f32.mrf.mxu0 }
 0x10a   :  { %v1083_v42 = vpop.f32.mrf.mxu1  ;;  %v733_v43 = vadd.f32 %v1081_v40, %v693_v39 }
 0x10c   :  { %v738_v44 = vmax.f32 %v733_v43, 0.0 }
 0x10e   :  { %v739_v45 = vpack.c.bf16 %v738_v44, %v738_v44 }
 0x110   :  { %1104 = vmatmul.mubr.msk.bf16.vlgmr.msra.gmra.mxu0 %vm779_vm1, %v739_v45 }
 0x1d0   :  { %v817_v49 = vpop.f32.mrf.mxu0 }
 0x1d1   :  { %v818_v50 = vadd.f32 %v985_v48, %v817_v49 }
 0x1d2   :  { %v1105_v51 = vpop.f32.mrf.mxu0 }
 0x1d3   :  { %v823_v52 = vmax.f32 %v818_v50, 0.0 }
 0x1d4   :  { %v820_v53 = vpop.f32.mrf.mxu0 }
 0x1d5   :  { %v824_v54 = vpack.c.bf16 %v823_v52, %v823_v52 }
 0x1d6   :  { %v1106_v55 = vpop.f32.mrf.mxu0 }
 0x1d7   :  { %1116 = vmatmul.mubr.msk.bf16.vlgmr.msra.gmra.mxu1 %vm779_vm1, %v824_v54 }
 0x297   :  { %v901_v57 = vpop.f32.mrf.mxu1 }
 0x298   :  { %v902_v58 = vadd.f32 %v991_v56, %v901_v57 }
 0x299   :  { %v1117_v59 = vpop.f32.mrf.mxu1 }
 0x29a   :  { %907 = vst [vmem:[%s1492_s7] sm:$0xff] %v902_v58 }
 0x29b   :  { %v904_v60 = vpop.f32.mrf.mxu1 }
 0x29d   :  { %v1118_v61 = vpop.f32.mrf.mxu1 }

</bundles_post_ra>
